<compile_context>
chip_gen: v6e
topology: v6e:2x2x1
jax: 0.10.0
libtpu: 0.0.40
codegen_flags: <defaults>
</compile_context>

<pallas_src>
import jax
import jax.numpy as jnp
import numpy as np
from jax.experimental import pallas as pl
from jax.experimental.pallas import tpu as pltpu


def bottleneck_kernel(x_ref, s1_ref, b1_ref, w1_ref, s2_ref, b2_ref, w2_ref,
                      out_ref, pad_ref):
    """One batch element per grid step (channel-major, spatial flattened).

    x_ref:   (C, H*W)           raw input (NCHW with HW flattened)
    s1_ref:  (C, 1)             folded BN1 scale
    b1_ref:  (C, 1)             folded BN1 bias
    w1_ref:  (interC, C)        1x1 conv weight
    s2_ref:  (interC, 1)        folded BN2 scale
    b2_ref:  (interC, 1)        folded BN2 bias
    w2_ref:  (G, 9*interC)      3x3 conv weight, [g, (ky*3+kx)*interC + c]
    out_ref: (C+G, H*W)         fused concat output (NCHW with HW flattened)
    pad_ref: (H+2, W+2, interC) VMEM scratch: zero-bordered BN2/ReLU activation
    """
    C, HW = x_ref.shape
    interC = w1_ref.shape[0]
    G = w2_ref.shape[0]
    Hp, Wp, _ = pad_ref.shape
    H, W = Hp - 2, Wp - 2

    # ---- BN1 (eval, folded) + ReLU, channel-major (C, HW).
    x = x_ref[...]
    a1 = jnp.maximum(x * s1_ref[...] + b1_ref[...], 0.0)

    # ---- conv1 (1x1): one MXU matmul, (interC, C) @ (C, HW) -> (interC, HW).
    t = jax.lax.dot_general(
        w1_ref[...], a1,
        dimension_numbers=(((1,), (0,)), ((), ())),
        preferred_element_type=jnp.float32)

    # ---- BN2 + ReLU, channel-major.
    a2 = jnp.maximum(t * s2_ref[...] + b2_ref[...], 0.0)      # (interC, HW)

    # ---- switch to channels-last for the spatial conv (one aligned transpose).
    a2_s = jnp.transpose(a2)                                   # (HW, interC)

    # ---- zero-padded spatial window: memset + interior store (no iota/where).
    pad_ref[...] = jnp.zeros(pad_ref.shape, pad_ref.dtype)
    pad_ref[1:H + 1, 1:W + 1, :] = a2_s.reshape(H, W, interC)

    # ---- im2col: one (HW, 9*interC) slab, conv2 = a single K=9*interC
    #      contraction.  (G, 9*interC) x (HW, 9*interC)^T -> (G, HW):
    #      lane-dense and already in NCHW orientation.
    patches = [pad_ref[ky:ky + H, kx:kx + W, :]
               for ky in range(3) for kx in range(3)]
    slab = jnp.concatenate(patches, axis=2).reshape(HW, 9 * interC)
    conv = jax.lax.dot_general(
        w2_ref[...], slab,
        dimension_numbers=(((1,), (1,)), ((), ())),
        preferred_element_type=jnp.float32)                    # (G, HW)

    # ---- fused torch.cat((x, out), 1): both stores are lane-dense (HW lanes).
    out_ref[0:C, :] = x.astype(out_ref.dtype)
    out_ref[C:C + G, :] = conv.astype(out_ref.dtype)


def bottleneck_forward(x_nchw,
                       gamma1, beta1, mean1, var1, w1_oi11,
                       gamma2, beta2, mean2, var2, w2_oihw,
                       eps=1e-5):
    """Pallas implementation of Bottleneck.forward (eval-mode BN). NCHW in/out."""
    N, C, H, W = x_nchw.shape
    interC = w1_oi11.shape[0]
    G = w2_oihw.shape[0]
    HW = H * W

    # Fold BN running stats into per-channel scale / bias (eval-mode BN).
    s1 = gamma1 / jnp.sqrt(var1 + eps)
    b1 = beta1 - mean1 * s1
    s2 = gamma2 / jnp.sqrt(var2 + eps)
    b2 = beta2 - mean2 * s2

    # Wrapper glue is free reshapes only (no transpose/pad/concat of x).
    x3 = x_nchw.reshape(N, C, HW)                              # (N, C, HW)
    w1_cm = w1_oi11.reshape(interC, C)                         # (interC, C)
    w2_flat = jnp.transpose(w2_oihw, (0, 2, 3, 1)).reshape(G, 9 * interC)

    out3 = pl.pallas_call(
        bottleneck_kernel,
        out_shape=jax.ShapeDtypeStruct((N, C + G, HW), x_nchw.dtype),
        grid=(N,),
        in_specs=[
            pl.BlockSpec((None, C, HW), lambda n: (n, 0, 0)),
            pl.BlockSpec((C, 1), lambda n: (0, 0)),
            pl.BlockSpec((C, 1), lambda n: (0, 0)),
            pl.BlockSpec((interC, C), lambda n: (0, 0)),
            pl.BlockSpec((interC, 1), lambda n: (0, 0)),
            pl.BlockSpec((interC, 1), lambda n: (0, 0)),
            pl.BlockSpec((G, 9 * interC), lambda n: (0, 0)),
        ],
        out_specs=pl.BlockSpec((None, C + G, HW), lambda n: (n, 0, 0)),
        scratch_shapes=[pltpu.VMEM((H + 2, W + 2, interC), jnp.float32)],
        compiler_params=pltpu.CompilerParams(
            dimension_semantics=("parallel",)),
    )(x3, s1.reshape(C, 1), b1.reshape(C, 1), w1_cm,
      s2.reshape(interC, 1), b2.reshape(interC, 1), w2_flat)

    return out3.reshape(N, C + G, H, W)


if __name__ == "__main__":
    N, C, H, W = 2, 4, 16, 16      # nChannels = 4
    G = 8                          # growthRate = 8
    interC = 4 * G                 # interChannels = 32

    key = jax.random.PRNGKey(0)
    k = jax.random.split(key, 11)
    x = jax.random.normal(k[0], (N, C, H, W), jnp.float32)

    gamma1 = 0.5 + jax.random.uniform(k[1], (C,), jnp.float32)
    beta1 = 0.1 * jax.random.normal(k[2], (C,), jnp.float32)
    mean1 = 0.1 * jax.random.normal(k[3], (C,), jnp.float32)
    var1 = 0.5 + jax.random.uniform(k[4], (C,), jnp.float32)
    w1 = jax.random.normal(k[5], (interC, C, 1, 1), jnp.float32) / np.sqrt(C)

    gamma2 = 0.5 + jax.random.uniform(k[6], (interC,), jnp.float32)
    beta2 = 0.1 * jax.random.normal(k[7], (interC,), jnp.float32)
    mean2 = 0.1 * jax.random.normal(k[8], (interC,), jnp.float32)
    var2 = 0.5 + jax.random.uniform(k[9], (interC,), jnp.float32)
    w2 = jax.random.normal(k[10], (G, interC, 3, 3), jnp.float32) / np.sqrt(interC * 9)

    fwd = jax.jit(bottleneck_forward)
    out = fwd(x, gamma1, beta1, mean1, var1, w1,
              gamma2, beta2, mean2, var2, w2)
    out = jax.block_until_ready(out)
    assert out.shape == (N, C + G, H, W), out.shape

    # Pure-JAX reference (same eval-mode BN semantics).
    eps = 1e-5
    s1r = (gamma1 / jnp.sqrt(var1 + eps)).reshape(1, C, 1, 1)
    b1r = beta1.reshape(1, C, 1, 1) - mean1.reshape(1, C, 1, 1) * s1r
    a1r = jnp.maximum(x * s1r + b1r, 0.0)
    tr = jax.lax.conv_general_dilated(
        a1r, w1, window_strides=(1, 1), padding=((0, 0), (0, 0)),
        dimension_numbers=("NCHW", "OIHW", "NCHW"))
    s2r = (gamma2 / jnp.sqrt(var2 + eps)).reshape(1, interC, 1, 1)
    b2r = beta2.reshape(1, interC, 1, 1) - mean2.reshape(1, interC, 1, 1) * s2r
    a2r = jnp.maximum(tr * s2r + b2r, 0.0)
    conv2_ref = jax.lax.conv_general_dilated(
        a2r, w2, window_strides=(1, 1), padding=((1, 1), (1, 1)),
        dimension_numbers=("NCHW", "OIHW", "NCHW"))
    ref = jnp.concatenate([x, conv2_ref], axis=1)

    # The fused-concat passthrough rows must equal x bit-exactly.
    np.testing.assert_array_equal(np.asarray(out[:, :C]), np.asarray(x))
    # Conv path: tolerance allows for MXU default-precision (bf16-pass)
    # differences between the Pallas matmul formulation and the XLA conv
    # reference; structural bugs would produce O(0.1..1) errors.
    np.testing.assert_allclose(np.asarray(out), np.asarray(ref),
                               atol=1e-2, rtol=1e-2)
    print("KERNEL_OK")
</pallas_src>

<mosaic_0001>
module attributes {stable_mosaic.version = 11 : i64} {
  func.func @bottleneck_kernel(%arg0: i32, %arg1: memref<1x4x256xf32, #tpu.memory_space<vmem>>, %arg2: memref<4x1xf32, #tpu.memory_space<vmem>>, %arg3: memref<4x1xf32, #tpu.memory_space<vmem>>, %arg4: memref<32x4xf32, #tpu.memory_space<vmem>>, %arg5: memref<32x1xf32, #tpu.memory_space<vmem>>, %arg6: memref<32x1xf32, #tpu.memory_space<vmem>>, %arg7: memref<8x288xf32, #tpu.memory_space<vmem>>, %arg8: memref<1x12x256xf32, #tpu.memory_space<vmem>>, %arg9: memref<18x18x32xf32, #tpu.memory_space<vmem>>) attributes {dimension_semantics = [#tpu.dimension_semantics<parallel>], iteration_bounds = array<i64: 2>, scalar_prefetch = 0 : i64, scratch_operands = 1 : i64, tpu.core_type = #tpu.core_type<tc>, window_params = [{transform_indices = @transform_0, window_bounds = array<i64: 1, 4, 256>}, {pipeline_mode = #tpu.pipeline_mode<synchronous>, transform_indices = @transform_1, window_bounds = array<i64: 4, 1>}, {pipeline_mode = #tpu.pipeline_mode<synchronous>, transform_indices = @transform_2, window_bounds = array<i64: 4, 1>}, {pipeline_mode = #tpu.pipeline_mode<synchronous>, transform_indices = @transform_3, window_bounds = array<i64: 32, 4>}, {pipeline_mode = #tpu.pipeline_mode<synchronous>, transform_indices = @transform_4, window_bounds = array<i64: 32, 1>}, {pipeline_mode = #tpu.pipeline_mode<synchronous>, transform_indices = @transform_5, window_bounds = array<i64: 32, 1>}, {pipeline_mode = #tpu.pipeline_mode<synchronous>, transform_indices = @transform_6, window_bounds = array<i64: 8, 288>}, {transform_indices = @transform_7, window_bounds = array<i64: 1, 12, 256>}]} {
    %c0 = arith.constant 0 : index
    %c0_0 = arith.constant 0 : index
    %c0_1 = arith.constant 0 : index
    %0 = vector.load %arg1[%c0, %c0_0, %c0_1] : memref<1x4x256xf32, #tpu.memory_space<vmem>>, vector<1x4x256xf32>
    %1 = vector.shape_cast %0 : vector<1x4x256xf32> to vector<4x256xf32>
    %c0_2 = arith.constant 0 : index
    %c0_3 = arith.constant 0 : index
    %2 = vector.load %arg2[%c0_2, %c0_3] : memref<4x1xf32, #tpu.memory_space<vmem>>, vector<4x1xf32>
    %3 = vector.broadcast %2 : vector<4x1xf32> to vector<4x256xf32>
    %4 = arith.mulf %1, %3 : vector<4x256xf32>
    %c0_4 = arith.constant 0 : index
    %c0_5 = arith.constant 0 : index
    %5 = vector.load %arg3[%c0_4, %c0_5] : memref<4x1xf32, #tpu.memory_space<vmem>>, vector<4x1xf32>
    %6 = vector.broadcast %5 : vector<4x1xf32> to vector<4x256xf32>
    %7 = arith.addf %4, %6 : vector<4x256xf32>
    %cst = arith.constant 0.000000e+00 : f32
    %8 = vector.broadcast %cst : f32 to vector<4x256xf32>
    %9 = arith.maximumf %7, %8 : vector<4x256xf32>
    %c0_6 = arith.constant 0 : index
    %c0_7 = arith.constant 0 : index
    %10 = vector.load %arg4[%c0_6, %c0_7] : memref<32x4xf32, #tpu.memory_space<vmem>>, vector<32x4xf32>
    %cst_8 = arith.constant dense<0.000000e+00> : vector<32x256xf32>
    %11 = tpu.matmul %10, %9, %cst_8 {dimension_numbers = #tpu.dot_dimension_numbers<[1], [0], [0], [1], [0, 0, 1, 1], [], []>} : vector<32x4xf32>, vector<4x256xf32>, vector<32x256xf32> -> vector<32x256xf32>
    %c0_9 = arith.constant 0 : index
    %c0_10 = arith.constant 0 : index
    %12 = vector.load %arg5[%c0_9, %c0_10] : memref<32x1xf32, #tpu.memory_space<vmem>>, vector<32x1xf32>
    %13 = vector.broadcast %12 : vector<32x1xf32> to vector<32x256xf32>
    %14 = arith.mulf %11, %13 : vector<32x256xf32>
    %c0_11 = arith.constant 0 : index
    %c0_12 = arith.constant 0 : index
    %15 = vector.load %arg6[%c0_11, %c0_12] : memref<32x1xf32, #tpu.memory_space<vmem>>, vector<32x1xf32>
    %16 = vector.broadcast %15 : vector<32x1xf32> to vector<32x256xf32>
    %17 = arith.addf %14, %16 : vector<32x256xf32>
    %cst_13 = arith.constant 0.000000e+00 : f32
    %18 = vector.broadcast %cst_13 : f32 to vector<32x256xf32>
    %19 = arith.maximumf %17, %18 : vector<32x256xf32>
    %20 = tpu.transpose %19, [1, 0] : vector<32x256xf32> -> vector<256x32xf32>
    %cst_14 = arith.constant 0.000000e+00 : f32
    %21 = vector.broadcast %cst_14 : f32 to vector<18x18x32xf32>
    %c0_15 = arith.constant 0 : index
    %c0_16 = arith.constant 0 : index
    %c0_17 = arith.constant 0 : index
    %22 = vector.load %arg9[%c0_15, %c0_16, %c0_17] : memref<18x18x32xf32, #tpu.memory_space<vmem>>, vector<18x18x32xf32>
    tpu.vector_store %arg9[%c0_15, %c0_16, %c0_17], %21 {strides = array<i32>} : memref<18x18x32xf32, #tpu.memory_space<vmem>>, vector<18x18x32xf32>,
    %23 = vector.shape_cast %20 : vector<256x32xf32> to vector<16x16x32xf32>
    %c1 = arith.constant 1 : index
    %c1_18 = arith.constant 1 : index
    %c0_19 = arith.constant 0 : index
    %24 = vector.load %arg9[%c1, %c1_18, %c0_19] : memref<18x18x32xf32, #tpu.memory_space<vmem>>, vector<16x16x32xf32>
    tpu.vector_store %arg9[%c1, %c1_18, %c0_19], %23 {strides = array<i32>} : memref<18x18x32xf32, #tpu.memory_space<vmem>>, vector<16x16x32xf32>,
    %c0_20 = arith.constant 0 : index
    %c0_21 = arith.constant 0 : index
    %c0_22 = arith.constant 0 : index
    %25 = vector.load %arg9[%c0_20, %c0_21, %c0_22] : memref<18x18x32xf32, #tpu.memory_space<vmem>>, vector<16x16x32xf32>
    %c0_23 = arith.constant 0 : index
    %c1_24 = arith.constant 1 : index
    %c0_25 = arith.constant 0 : index
    %26 = vector.load %arg9[%c0_23, %c1_24, %c0_25] : memref<18x18x32xf32, #tpu.memory_space<vmem>>, vector<16x16x32xf32>
    %c0_26 = arith.constant 0 : index
    %c2 = arith.constant 2 : index
    %c0_27 = arith.constant 0 : index
    %27 = vector.load %arg9[%c0_26, %c2, %c0_27] : memref<18x18x32xf32, #tpu.memory_space<vmem>>, vector<16x16x32xf32>
    %c1_28 = arith.constant 1 : index
    %c0_29 = arith.constant 0 : index
    %c0_30 = arith.constant 0 : index
    %28 = vector.load %arg9[%c1_28, %c0_29, %c0_30] : memref<18x18x32xf32, #tpu.memory_space<vmem>>, vector<16x16x32xf32>
    %c1_31 = arith.constant 1 : index
    %c1_32 = arith.constant 1 : index
    %c0_33 = arith.constant 0 : index
    %29 = vector.load %arg9[%c1_31, %c1_32, %c0_33] : memref<18x18x32xf32, #tpu.memory_space<vmem>>, vector<16x16x32xf32>
    %c1_34 = arith.constant 1 : index
    %c2_35 = arith.constant 2 : index
    %c0_36 = arith.constant 0 : index
    %30 = vector.load %arg9[%c1_34, %c2_35, %c0_36] : memref<18x18x32xf32, #tpu.memory_space<vmem>>, vector<16x16x32xf32>
    %c2_37 = arith.constant 2 : index
    %c0_38 = arith.constant 0 : index
    %c0_39 = arith.constant 0 : index
    %31 = vector.load %arg9[%c2_37, %c0_38, %c0_39] : memref<18x18x32xf32, #tpu.memory_space<vmem>>, vector<16x16x32xf32>
    %c2_40 = arith.constant 2 : index
    %c1_41 = arith.constant 1 : index
    %c0_42 = arith.constant 0 : index
    %32 = vector.load %arg9[%c2_40, %c1_41, %c0_42] : memref<18x18x32xf32, #tpu.memory_space<vmem>>, vector<16x16x32xf32>
    %c2_43 = arith.constant 2 : index
    %c2_44 = arith.constant 2 : index
    %c0_45 = arith.constant 0 : index
    %33 = vector.load %arg9[%c2_43, %c2_44, %c0_45] : memref<18x18x32xf32, #tpu.memory_space<vmem>>, vector<16x16x32xf32>
    %34 = tpu.concatenate %25, %26, %27, %28, %29, %30, %31, %32, %33 in 2 : vector<16x16x32xf32>, vector<16x16x32xf32>, vector<16x16x32xf32>, vector<16x16x32xf32>, vector<16x16x32xf32>, vector<16x16x32xf32>, vector<16x16x32xf32>, vector<16x16x32xf32>, vector<16x16x32xf32> -> vector<16x16x288xf32>
    %35 = vector.shape_cast %34 : vector<16x16x288xf32> to vector<256x288xf32>
    %c0_46 = arith.constant 0 : index
    %c0_47 = arith.constant 0 : index
    %36 = vector.load %arg7[%c0_46, %c0_47] : memref<8x288xf32, #tpu.memory_space<vmem>>, vector<8x288xf32>
    %cst_48 = arith.constant dense<0.000000e+00> : vector<8x256xf32>
    %37 = tpu.matmul %36, %35, %cst_48 {dimension_numbers = #tpu.dot_dimension_numbers<[1], [1], [0], [0], [0, 0, 1, 0], [], []>} : vector<8x288xf32>, vector<256x288xf32>, vector<8x256xf32> -> vector<8x256xf32>
    %c0_49 = arith.constant 0 : index
    %c0_50 = arith.constant 0 : index
    %c0_51 = arith.constant 0 : index
    %38 = vector.load %arg8[%c0_49, %c0_50, %c0_51] : memref<1x12x256xf32, #tpu.memory_space<vmem>>, vector<1x4x256xf32>
    %39 = vector.shape_cast %38 : vector<1x4x256xf32> to vector<4x256xf32>
    %40 = vector.shape_cast %1 : vector<4x256xf32> to vector<1x4x256xf32>
    tpu.vector_store %arg8[%c0_49, %c0_50, %c0_51], %40 {strides = array<i32>} : memref<1x12x256xf32, #tpu.memory_space<vmem>>, vector<1x4x256xf32>,
    %c0_52 = arith.constant 0 : index
    %c4 = arith.constant 4 : index
    %c0_53 = arith.constant 0 : index
    %41 = vector.load %arg8[%c0_52, %c4, %c0_53] : memref<1x12x256xf32, #tpu.memory_space<vmem>>, vector<1x8x256xf32>
    %42 = vector.shape_cast %41 : vector<1x8x256xf32> to vector<8x256xf32>
    %43 = vector.shape_cast %37 : vector<8x256xf32> to vector<1x8x256xf32>
    tpu.vector_store %arg8[%c0_52, %c4, %c0_53], %43 {strides = array<i32>} : memref<1x12x256xf32, #tpu.memory_space<vmem>>, vector<1x8x256xf32>,
    return
  }
  func.func @transform_0(%arg0: i32) -> (i32, i32, i32) {
    %c0_i32 = arith.constant 0 : i32
    %c0_i32_0 = arith.constant 0 : i32
    %c0_i32_1 = arith.constant 0 : i32
    return %arg0, %c0_i32, %c0_i32_0 : i32, i32, i32
  }
  func.func @transform_1(%arg0: i32) -> (i32, i32) {
    %c0_i32 = arith.constant 0 : i32
    %c0_i32_0 = arith.constant 0 : i32
    %c0_i32_1 = arith.constant 0 : i32
    return %c0_i32, %c0_i32_0 : i32, i32
  }
  func.func @transform_2(%arg0: i32) -> (i32, i32) {
    %c0_i32 = arith.constant 0 : i32
    %c0_i32_0 = arith.constant 0 : i32
    %c0_i32_1 = arith.constant 0 : i32
    return %c0_i32, %c0_i32_0 : i32, i32
  }
  func.func @transform_3(%arg0: i32) -> (i32, i32) {
    %c0_i32 = arith.constant 0 : i32
    %c0_i32_0 = arith.constant 0 : i32
    %c0_i32_1 = arith.constant 0 : i32
    return %c0_i32, %c0_i32_0 : i32, i32
  }
  func.func @transform_4(%arg0: i32) -> (i32, i32) {
    %c0_i32 = arith.constant 0 : i32
    %c0_i32_0 = arith.constant 0 : i32
    %c0_i32_1 = arith.constant 0 : i32
    return %c0_i32, %c0_i32_0 : i32, i32
  }
  func.func @transform_5(%arg0: i32) -> (i32, i32) {
    %c0_i32 = arith.constant 0 : i32
    %c0_i32_0 = arith.constant 0 : i32
    %c0_i32_1 = arith.constant 0 : i32
    return %c0_i32, %c0_i32_0 : i32, i32
  }
  func.func @transform_6(%arg0: i32) -> (i32, i32) {
    %c0_i32 = arith.constant 0 : i32
    %c0_i32_0 = arith.constant 0 : i32
    %c0_i32_1 = arith.constant 0 : i32
    return %c0_i32, %c0_i32_0 : i32, i32
  }
  func.func @transform_7(%arg0: i32) -> (i32, i32, i32) {
    %c0_i32 = arith.constant 0 : i32
    %c0_i32_0 = arith.constant 0 : i32
    %c0_i32_1 = arith.constant 0 : i32
    return %arg0, %c0_i32, %c0_i32_0 : i32, i32, i32
  }
}

</mosaic_0001>

<bundles_post_ra>
// kernel: bottleneck_forward.1
= control target key start
LH: loop header
LB: loop body
LE: loop exit
PB: predicated region body
PF: predicated region fallthrough
CT: control target
= control target key end

     0   :  { %s2380_s24 = smov 0   ;;  %s3804_s0 = inlined_call_operand.vmem [shape: f32[2,4,256], index: 0, kind: input, shape index: {}]   ;;  %s3805_s1 = inlined_call_operand.vmem [shape: f32[4,1], index: 1, kind: input, shape index: {}]   ;;  %s3806_s2 = inlined_call_operand.vmem [shape: f32[4,1], index: 2, kind: input, shape index: {}]   ;;  %s3807_s3 = inlined_call_operand.vmem [shape: f32[32,4], index: 3, kind: input, shape index: {}]   ;;  %s3808_s4 = inlined_call_operand.vmem [shape: f32[32,1], index: 4, kind: input, shape index: {}]   ;;  %s3809_s5 = inlined_call_operand.vmem [shape: f32[32,1], index: 5, kind: input, shape index: {}]   ;;  %s3810_s6 = inlined_call_operand.vmem [shape: f32[8,288], index: 6, kind: input, shape index: {}]   ;;  %s3811_s7 = inlined_call_operand.vmem [shape: f32[2,12,256], index: 7, kind: output, shape index: {}]  }
   0x1 LB: > { %s2212_s25 = sadd.s32 4294967295, %s2332_s24   ;;  %p2216_p0 = scmp.ge.s32.totalorder %s2332_s24, 1  ;;  %s2332_s24 = sphi %s2380_s24, %s17_s24  }
   0x2   : > { %p237_p1 = scmp.lt.s32.totalorder %s2332_s24, 3 }
   0x4   : > { %p238_p2 = pnand %p2216_p0, %p237_p1 }
   0x6   : > { %241 = sbr.rel (%p238_p2) target bundleno = 1179 (0x49b), region = 48 }
   0xb   : > { %v280_v0 = vld [vmem:[%s3805_s1] sm:$0xf]  ;;  %v2334_v1 = vmov 0   ;;  %p269_p3 = scmp.lt.s32.totalorder %s2212_s25, 1  ;;  %v455_v6 = vld [vmem:[%s3809_s5 + $0x8] sm:$0xff]  ;;  %v2335_v7 = vmov 0.0   ;;  %v288_v24 = vlaneseq }
   0xc   : > { %2312 = vset.pattern.permute.xlu0 %v2334_v1  ;;  %2313 = vset.pattern.permute.xlu1 %v2334_v1  ;;  %v294_v2 = vld [vmem:[%s3806_s2] sm:$0xf]  ;;  %v456_v8 = vld [vmem:[%s3809_s5 + $0x10] sm:$0xff]  ;;  %vm558_vm0 = vcmask 261120   ;;  %vm561_vm1 = vcmask 254976   ;;  %v423_v10 = vld [vmem:[%s3808_s4 + $0x8] sm:$0xff] }
   0xd   : > { %283 = vperm.xlu0 %2312, %v280_v0   ;;  %s4039_s25 = smov (!%p269_p3, %s2212_s25), 1  ;;  %v454_v3 = vld [vmem:[%s3809_s5] sm:$0xff]  ;;  %397 = vmatprep.mubr.f32.mxu0 %v2335_v7  ;;  %559 = vst.msk [vmem:[#allocation2] sm:$0xff] %vm558_vm0, %v2335_v7  ;;  %560 = vst.msk [vmem:[#allocation2 + $0x8] sm:$0xff] %vm558_vm0, %v2335_v7  ;;  %v424_v11 = vld [vmem:[%s3808_s4 + $0x10] sm:$0xff]  ;;  %s2336_s28 = smov 32  }
   0xe   : > { %s2262_s30 = sshll.u32 %s4039_s25, 3  ;;  %s2263_s8 = sshll.u32 %s4039_s25, 5  ;;  %v422_v9 = vld [vmem:[%s3808_s4] sm:$0xff]  ;;  %563 = vst.msk [vmem:[#allocation2 + $0x18] sm:$0xff] %vm558_vm0, %v2335_v7  ;;  %564 = vst.msk [vmem:[#allocation2 + $0x20] sm:$0xff] %vm558_vm0, %v2335_v7  ;;  %v425_v13 = vld [vmem:[%s3808_s4 + $0x18] sm:$0xff] }
   0xf   : > { %s273_s11 = scalar_lea.vmem %s3804_s0, %s2262_s30  ;;  %s2403_s16 = scalar_lea.vmem %s3811_s7, %s2263_s8  ;;  %428 = vperm.xlu1 %2313, %v422_v9   ;;  %566 = vst.msk [vmem:[#allocation2 + $0x30] sm:$0xff] %vm558_vm0, %v2335_v7  ;;  %567 = vst.msk [vmem:[#allocation2 + $0x38] sm:$0xff] %vm558_vm0, %v2335_v7  ;;  %v457_v15 = vld [vmem:[%s3809_s5 + $0x18] sm:$0xff]  ;;  %v2339_v22 = vmov 839922192   ;;  %v289_v26 = vshrl.u32 %v288_v24, 7 }
  0x10   : > { %v2405_v4 = vld [vmem:[%s273_s11] sm:$0xff]  ;;  %569 = vst.msk [vmem:[#allocation2 + $0x48] sm:$0xff] %vm558_vm0, %v2335_v7  ;;  %570 = vst.msk [vmem:[#allocation2 + $0x50] sm:$0xff] %vm558_vm0, %v2335_v7  ;;  %s2337_s10 = smov 64   ;;  %s2338_s11 = smov 96   ;;  %v286_v23 = vunpack.c.l.s4 %v2339_v22  ;;  %vm328_vm2 = vcmask 1043456  }
  0x11   : > { %297 = vperm.xlu0 %2312, %v294_v2   ;;  %v2143_v5 = vcombine.high %v2405_v4, %v2405_v4  ;;  %2145 = vst [vmem:[%s2403_s16] sm:$0xf] %v2405_v4  ;;  %572 = vst.msk [vmem:[#allocation2 + $0x60] sm:$0xff] %vm558_vm0, %v2335_v7  ;;  %v309_v36 = vld [vmem:[%s3807_s3] sm:$0xff]  ;;  %vm315_vm3 = vcmask 31744   ;;  %v310_v37 = vld [vmem:[%s3807_s3 + $0x8] sm:$0xff]  ;;  %vm1736_vm4 = vcmask 523264  }
  0x12   : > { %573 = vst.msk [vmem:[#allocation2 + $0x68] sm:$0xff] %vm558_vm0, %v2335_v7  ;;  %575 = vst.msk [vmem:[#allocation2 + $0x78] sm:$0xff] %vm558_vm0, %v2335_v7  ;;  %v287_v25 = vunpack.c.0.s8 %v286_v23  ;;  %v311_v38 = vld [vmem:[%s3807_s3 + $0x10] sm:$0xff]  ;;  %v312_v39 = vld [vmem:[%s3807_s3 + $0x18] sm:$0xff]  ;;  %vm1769_vm5 = vcmask 785408  }
  0x13   : > { %2146 = vst [vmem:[%s2403_s16 + $0x8] sm:$0xf] %v2143_v5  ;;  %576 = vst.msk [vmem:[#allocation2 + $0x80] sm:$0xff] %vm558_vm0, %v2335_v7  ;;  %433 = vperm.xlu1 %2313, %v423_v10  }
  0x14   : > { %578 = vst.msk [vmem:[#allocation2 + $0x90] sm:$0xff] %vm558_vm0, %v2335_v7  ;;  %579 = vst.msk [vmem:[#allocation2 + $0x98] sm:$0xff] %vm558_vm0, %v2335_v7  ;;  %v679_v12 = vld [vmem:[#allocation2 + $0x1] sm:$0xff]  ;;  %v290_v27 = vsub.s32 %v287_v25, %v289_v26 }
  0x15   : > { %460 = vperm.xlu0 %2312, %v454_v3   ;;  %581 = vst.msk [vmem:[#allocation2 + $0xa8] sm:$0xff] %vm558_vm0, %v2335_v7  ;;  %582 = vst.msk [vmem:[#allocation2 + $0xb0] sm:$0xff] %vm558_vm0, %v2335_v7  ;;  %v711_v17 = vld [vmem:[#allocation2 + $0x2] sm:$0xff] }
  0x16   : > { %584 = vst.msk [vmem:[#allocation2 + $0xc0] sm:$0xff] %vm558_vm0, %v2335_v7  ;;  %585 = vst.msk [vmem:[#allocation2 + $0xc8] sm:$0xff] %vm558_vm0, %v2335_v7 }
  0x17   : > { %587 = vst.msk [vmem:[#allocation2 + $0xd8] sm:$0xff] %vm558_vm0, %v2335_v7  ;;  %588 = vst.msk [vmem:[#allocation2 + $0xe0] sm:$0xff] %vm558_vm0, %v2335_v7  ;;  %438 = vperm.xlu1 %2313, %v424_v11  }
  0x18   : > { %590 = vst.msk [vmem:[#allocation2 + $0xf0] sm:$0xff] %vm558_vm0, %v2335_v7  ;;  %591 = vst.msk [vmem:[#allocation2 + $0xf8] sm:$0xff] %vm558_vm0, %v2335_v7 }
  0x19   : > { %465 = vperm.xlu0 %2312, %v455_v6   ;;  %593 = vst.msk [vmem:[#allocation2 + $0x108] sm:$0xff] %vm558_vm0, %v2335_v7  ;;  %594 = vst.msk [vmem:[#allocation2 + $0x110] sm:$0xff] %vm558_vm0, %v2335_v7 }
  0x1a   : > { %596 = vst.msk [vmem:[#allocation2 + $0x120] sm:$0xff] %vm558_vm0, %v2335_v7  ;;  %597 = vst.msk [vmem:[#allocation2 + $0x128] sm:$0xff] %vm558_vm0, %v2335_v7 }
  0x1b   : > { %599 = vst.msk [vmem:[#allocation2 + $0x138] sm:$0xff] %vm558_vm0, %v2335_v7  ;;  %600 = vst.msk [vmem:[#allocation2 + $0x140] sm:$0xff] %vm558_vm0, %v2335_v7  ;;  %443 = vperm.xlu1 %2313, %v425_v13  }
  0x1c   : > { %602 = vst.msk [vmem:[#allocation2 + $0x150] sm:$0xff] %vm558_vm0, %v2335_v7  ;;  %603 = vst.msk [vmem:[#allocation2 + $0x158] sm:$0xff] %vm558_vm0, %v2335_v7 }
  0x1d   : > { %470 = vperm.xlu0 %2312, %v456_v8   ;;  %605 = vst.msk [vmem:[#allocation2 + $0x168] sm:$0xff] %vm558_vm0, %v2335_v7  ;;  %606 = vst.msk [vmem:[#allocation2 + $0x170] sm:$0xff] %vm558_vm0, %v2335_v7 }
  0x1e   : > { %608 = vst.msk [vmem:[#allocation2 + $0x180] sm:$0xff] %vm558_vm0, %v2335_v7  ;;  %609 = vst.msk [vmem:[#allocation2 + $0x188] sm:$0xff] %vm558_vm0, %v2335_v7 }
  0x1f   : > { %611 = vst.msk [vmem:[#allocation2 + $0x198] sm:$0xff] %vm558_vm0, %v2335_v7  ;;  %612 = vst.msk [vmem:[#allocation2 + $0x1a0] sm:$0xff] %vm558_vm0, %v2335_v7  ;;  %475 = vperm.xlu1 %2313, %v457_v15  }
  0x20   : > { %562 = vst.msk [vmem:[#allocation2 + $0x10] sm:$0x3] %vm561_vm1, %v2335_v7  ;;  %565 = vst.msk [vmem:[#allocation2 + $0x28] sm:$0x3] %vm561_vm1, %v2335_v7 }
  0x21   : > { %568 = vst.msk [vmem:[#allocation2 + $0x40] sm:$0x3] %vm561_vm1, %v2335_v7  ;;  %571 = vst.msk [vmem:[#allocation2 + $0x58] sm:$0x3] %vm561_vm1, %v2335_v7  ;;  %968 = vrot.lane.b32.xlu0 %v679_v12, %s2336_s28 }
  0x22   : > { %574 = vst.msk [vmem:[#allocation2 + $0x70] sm:$0x3] %vm561_vm1, %v2335_v7  ;;  %577 = vst.msk [vmem:[#allocation2 + $0x88] sm:$0x3] %vm561_vm1, %v2335_v7 }
  0x23   : > { %580 = vst.msk [vmem:[#allocation2 + $0xa0] sm:$0x3] %vm561_vm1, %v2335_v7  ;;  %583 = vst.msk [vmem:[#allocation2 + $0xb8] sm:$0x3] %vm561_vm1, %v2335_v7  ;;  %1096 = vrot.lane.b32.xlu1 %v711_v17, %s2337_s10 }
  0x24   : > { %586 = vst.msk [vmem:[#allocation2 + $0xd0] sm:$0x3] %vm561_vm1, %v2335_v7  ;;  %589 = vst.msk [vmem:[#allocation2 + $0xe8] sm:$0x3] %vm561_vm1, %v2335_v7 }
  0x25   : > { %592 = vst.msk [vmem:[#allocation2 + $0x100] sm:$0x3] %vm561_vm1, %v2335_v7  ;;  %595 = vst.msk [vmem:[#allocation2 + $0x118] sm:$0x3] %vm561_vm1, %v2335_v7 }
  0x26   : > { %598 = vst.msk [vmem:[#allocation2 + $0x130] sm:$0x3] %vm561_vm1, %v2335_v7  ;;  %601 = vst.msk [vmem:[#allocation2 + $0x148] sm:$0x3] %vm561_vm1, %v2335_v7  ;;  %v871_v18 = vld [vmem:[#allocation2 + $0x1a0] sm:$0xff]  ;;  %v870_v20 = vld [vmem:[#allocation2 + $0x198] sm:$0xff] }
  0x27   : > { %604 = vst.msk [vmem:[#allocation2 + $0x160] sm:$0x3] %vm561_vm1, %v2335_v7  ;;  %607 = vst.msk [vmem:[#allocation2 + $0x178] sm:$0x3] %vm561_vm1, %v2335_v7  ;;  %v680_v14 = vld [vmem:[#allocation2 + $0x9] sm:$0xff]  ;;  %v902_v21 = vld [vmem:[#allocation2 + $0x199] sm:$0xff] }
  0x28   : > { %610 = vst.msk [vmem:[#allocation2 + $0x190] sm:$0x3] %vm561_vm1, %v2335_v7  ;;  %613 = vst.msk [vmem:[#allocation2 + $0x1a8] sm:$0x3] %vm561_vm1, %v2335_v7  ;;  %970 = vrot.lane.b32.xlu0 %v680_v14, %s2336_s28  ;;  %v712_v16 = vld [vmem:[#allocation2 + $0xa] sm:$0xff] }
  0x2c   : > { %1098 = vrot.lane.b32.xlu0 %v712_v16, %s2337_s10 }
  0x2f   : > { %v903_v19 = vld [vmem:[#allocation2 + $0x1a1] sm:$0xff] }
  0x30   : > { %1542 = vrot.lane.b32.xlu0 %v871_v18, %s2337_s10  ;;  %v935_v13 = vld [vmem:[#allocation2 + $0x1a2] sm:$0xff] }
  0x34   : > { %1670 = vrot.lane.b32.xlu0 %v903_v19, %s2338_s11 }
  0x38   : > { %1540 = vrot.lane.b32.xlu0 %v870_v20, %s2337_s10 }
  0x3c   : > { %1668 = vrot.lane.b32.xlu0 %v902_v21, %s2338_s11 }
  0x88   : > { %v284_v28 = vpop.permute.xlu0 %283 }
  0x89   : > { %v291_v29 = vrot.slane %v284_v28, %v290_v27 }
  0x8a   : > { %v429_v40 = vpop.permute.xlu1 %428 }
  0x8b   : > { %v293_v31 = vmul.f32 %v291_v29, %v2405_v4 }
  0x8c   : > { %v298_v30 = vpop.permute.xlu0 %297 }
  0x8d   : > { %v305_v32 = vrot.slane %v298_v30, %v290_v27 }
  0x8e   : > { %v434_v41 = vpop.permute.xlu1 %433 }
  0x8f   : > { %v307_v33 = vadd.f32 %v305_v32, %v293_v31 }
  0x90   : > { %v461_v42 = vpop.permute.xlu0 %460 }
  0x91   : > { %v308_v34 = vmax.f32 %v307_v33, 0.0 }
  0x92   : > { %v439_v45 = vpop.permute.xlu1 %438 }
  0x93   : > { %v314_v35 = vcombine.high %v308_v34, %v308_v34 }
  0x94   : > { %v466_v49 = vpop.permute.xlu0 %465 }
  0x95   : > { %2221 = vmatprep.subr.msk.mxu0 %vm328_vm2, %v314_v35 }
  0x96   : > { %2222 = vmatpush1.msk.msra.mxu0 %vm328_vm2, %v308_v34  ;;  %v444_v58 = vpop.permute.xlu1 %443 }
  0x97   : > { %2223 = vmatmul.mubr.msk.f32.vlgmr.msra.gmra.mxu0 %vm315_vm3, %v309_v36  ;;  %2264 = vmatprep.subr.msk.mxu0 %vm558_vm0, %v935_v13  ;;  %v934_v36 = vld [vmem:[#allocation2 + $0x19a] sm:$0xff] }
  0x98   : > { %403 = vmatprep.mubr.f32.mxu0 %v2335_v7  ;;  %v471_v63 = vpop.permute.xlu0 %470 }
  0x9a   : > { %v476_v8 = vpop.permute.xlu1 %475 }
  0x9b   : > { %2224 = vmatmul.mubr.msk.f32.gmra.mxu0 %vm315_vm3, %v310_v37 }
  0x9c   : > { %409 = vmatprep.mubr.f32.mxu0 %v2335_v7  ;;  %v2567_v17 = vpop.permute.xlu0 %968 }
  0x9d   : > { %3836 = vst [vmem:[#allocation3_spill] sm:$0xff] %v2567_v17 }
  0x9e   : > { %v2581_v24 = vpop.permute.xlu1 %1096 }
  0x9f   : > { %2225 = vmatmul.mubr.msk.f32.gmra.mxu0 %vm315_vm3, %v311_v38  ;;  %3843 = vst [vmem:[#allocation10_spill] sm:$0xff] %v2581_v24 }
  0xa0   : > { %415 = vmatprep.mubr.f32.mxu0 %v2335_v7  ;;  %v2569_v18 = vpop.permute.xlu0 %970 }
  0xa1   : > { %3837 = vst [vmem:[#allocation4_spill] sm:$0xff] %v2569_v18 }
  0xa3   : > { %2226 = vmatmul.mubr.msk.f32.gmra.mxu0 %vm315_vm3, %v312_v39 }
  0xa4   : > { %v2571_v19 = vpop.permute.xlu0 %1098 }
  0xa5   : > { %3838 = vst [vmem:[#allocation5_spill] sm:$0xff] %v2571_v19 }
  0xa8   : > { %v2573_v20 = vpop.permute.xlu0 %1542 }
  0xa9   : > { %3839 = vst [vmem:[#allocation6_spill] sm:$0xff] %v2573_v20 }
  0xac   : > { %v2575_v21 = vpop.permute.xlu0 %1670 }
  0xad   : > { %3840 = vst [vmem:[#allocation7_spill] sm:$0xff] %v2575_v21 }
  0xb0   : > { %v2577_v22 = vpop.permute.xlu0 %1540 }
  0xb1   : > { %3841 = vst [vmem:[#allocation8_spill] sm:$0xff] %v2577_v22 }
  0xb4   : > { %v2579_v23 = vpop.permute.xlu0 %1668 }
  0xb5   : > { %3842 = vst [vmem:[#allocation9_spill] sm:$0xff] %v2579_v23 }
 0x157   : > { %v399_v43 = vpop.f32.mrf.mxu0 }
 0x158   : > { %v446_v44 = vmul.f32 %v429_v40, %v399_v43 }
 0x159   : > { %v401_v46 = vpop.f32.mrf.mxu0 }
 0x15a   : > { %v478_v47 = vadd.f32 %v461_v42, %v446_v44  ;;  %v447_v48 = vmul.f32 %v429_v40, %v401_v46 }
 0x15b   : > { %v405_v50 = vpop.f32.mrf.mxu0 }
 0x15c   : > { %v486_v51 = vmax.f32 %v478_v47, 0.0  ;;  %v479_v52 = vadd.f32 %v461_v42, %v447_v48  ;;  %v448_v53 = vmul.f32 %v434_v41, %v405_v50 }
 0x15d   : > { %v407_v54 = vpop.f32.mrf.mxu0 }
 0x15e   : > { %v487_v55 = vmax.f32 %v479_v52, 0.0  ;;  %v480_v56 = vadd.f32 %v466_v49, %v448_v53  ;;  %v449_v57 = vmul.f32 %v434_v41, %v407_v54  ;;  %494 = vxpose.xlu0.b32.start [1/4] (short) %v486_v51, 128 }
 0x15f   : > { %v411_v59 = vpop.f32.mrf.mxu0 }
 0x160   : > { %v488_v60 = vmax.f32 %v480_v56, 0.0  ;;  %v481_v61 = vadd.f32 %v466_v49, %v449_v57  ;;  %v450_v62 = vmul.f32 %v439_v45, %v411_v59  ;;  %526 = vxpose.xlu1.b32.start [1/4] (short) %v487_v55, 128 }
 0x161   : > { %v413_v0 = vpop.f32.mrf.mxu0 }
 0x162   : > { %v489_v1 = vmax.f32 %v481_v61, 0.0  ;;  %v482_v2 = vadd.f32 %v471_v63, %v450_v62  ;;  %v451_v3 = vmul.f32 %v439_v45, %v413_v0  ;;  %495 = vxpose.xlu0.b32.cont [2/4] (short) %v488_v60, 128 }
 0x163   : > { %v417_v4 = vpop.f32.mrf.mxu0 }
 0x164   : > { %v490_v5 = vmax.f32 %v482_v2, 0.0  ;;  %v483_v6 = vadd.f32 %v471_v63, %v451_v3  ;;  %v452_v7 = vmul.f32 %v444_v58, %v417_v4  ;;  %527 = vxpose.xlu1.b32.cont [2/4] (short) %v489_v1, 128 }
 0x165   : > { %v419_v9 = vpop.f32.mrf.mxu0 }
 0x166   : > { %v491_v10 = vmax.f32 %v483_v6, 0.0  ;;  %v484_v11 = vadd.f32 %v476_v8, %v452_v7  ;;  %v453_v12 = vmul.f32 %v444_v58, %v419_v9  ;;  %496 = vxpose.xlu0.b32.cont [3/4] (short) %v490_v5, 128 }
 0x168   : > { %v492_v14 = vmax.f32 %v484_v11, 0.0  ;;  %v485_v15 = vadd.f32 %v476_v8, %v453_v12  ;;  %528 = vxpose.xlu1.b32.cont [3/4] (short) %v491_v10, 128 }
 0x16a   : > { %v493_v16 = vmax.f32 %v485_v15, 0.0  ;;  %497 = vxpose.xlu0.b32.end [4/4] (short) %v492_v14, 128 }
 0x16c   : > { %529 = vxpose.xlu1.b32.end [4/4] (short) %v493_v16, 128 }
 0x1da   : > { %v510_v25 = vpop.trf.xlu0 }
 0x1db   : > { %615 = vst.msk [vmem:[#allocation2 + $0x19] sm:$0xff] %vm558_vm0, %v510_v25 }
 0x1dc   : > { %v542_v26 = vpop.trf.xlu1 }
 0x1dd   : > { %631 = vst.msk [vmem:[#allocation2 + $0xd9] sm:$0xff] %vm558_vm0, %v542_v26 }
 0x1de   : > { %v511_v27 = vpop.trf.xlu0 }
 0x1df   : > { %616 = vst.msk [vmem:[#allocation2 + $0x21] sm:$0xff] %vm558_vm0, %v511_v27 }
 0x1e0   : > { %v543_v28 = vpop.trf.xlu1 }
 0x1e1   : > { %632 = vst.msk [vmem:[#allocation2 + $0xe1] sm:$0xff] %vm558_vm0, %v543_v28 }
 0x1e2   : > { %v681_v29 = vld [vmem:[#allocation2 + $0x19] sm:$0xff]  ;;  %v512_v31 = vpop.trf.xlu0 }
 0x1e3   : > { %v743_v30 = vld [vmem:[#allocation2 + $0x18] sm:$0xff]  ;;  %972 = vrot.lane.b32.xlu0 %v681_v29, %s2336_s28  ;;  %617 = vst.msk [vmem:[#allocation2 + $0x31] sm:$0xff] %vm558_vm0, %v512_v31 }
 0x1e4   : > { %1224 = vrot.lane.b32.xlu1 %v743_v30, %s2338_s11  ;;  %v544_v32 = vpop.trf.xlu1  ;;  %v854_v33 = vld [vmem:[#allocation2 + $0xd8] sm:$0xff] }
 0x1e5   : > { %633 = vst.msk [vmem:[#allocation2 + $0xf1] sm:$0xff] %vm558_vm0, %v544_v32  ;;  %v886_v40 = vld [vmem:[#allocation2 + $0xd9] sm:$0xff] }
 0x1e6   : > { %v682_v34 = vld [vmem:[#allocation2 + $0x21] sm:$0xff]  ;;  %v513_v35 = vpop.trf.xlu0 }
 0x1e7   : > { %974 = vrot.lane.b32.xlu0 %v682_v34, %s2336_s28  ;;  %618 = vst.msk [vmem:[#allocation2 + $0x39] sm:$0xff] %vm558_vm0, %v513_v35  ;;  %v714_v39 = vld [vmem:[#allocation2 + $0x22] sm:$0xff]  ;;  %v713_v44 = vld [vmem:[#allocation2 + $0x1a] sm:$0xff] }
 0x1e8   : > { %1508 = vrot.lane.b32.xlu1 %v854_v33, %s2337_s10  ;;  %v545_v37 = vpop.trf.xlu1  ;;  %v919_v38 = vld [vmem:[#allocation2 + $0xe2] sm:$0xff]  ;;  %v918_v43 = vld [vmem:[#allocation2 + $0xda] sm:$0xff] }
 0x1e9   : > { %634 = vst.msk [vmem:[#allocation2 + $0xf9] sm:$0xff] %vm558_vm0, %v545_v37  ;;  %2265 = vmatpush3.xpose.msk.msra.mxu0 %vm558_vm0, %v919_v38  ;;  %v744_v47 = vld [vmem:[#allocation2 + $0x20] sm:$0xff] }
 0x1ea   : > { %2266 = vmatprep.subr.msk.mxu0 %vm558_vm0, %v934_v36  ;;  %v514_v41 = vpop.trf.xlu0  ;;  %v683_v50 = vld [vmem:[#allocation2 + $0x31] sm:$0xff]  ;;  %v855_v51 = vld [vmem:[#allocation2 + $0xe0] sm:$0xff] }
 0x1eb   : > { %1102 = vrot.lane.b32.xlu0 %v714_v39, %s2337_s10  ;;  %619 = vst.msk [vmem:[#allocation2 + $0x49] sm:$0xff] %vm558_vm0, %v514_v41  ;;  %v745_v54 = vld [vmem:[#allocation2 + $0x30] sm:$0xff]  ;;  %v887_v55 = vld [vmem:[#allocation2 + $0xe1] sm:$0xff] }
 0x1ec   : > { %1636 = vrot.lane.b32.xlu1 %v886_v40, %s2338_s11  ;;  %v546_v42 = vpop.trf.xlu1 }
 0x1ed   : > { %635 = vst.msk [vmem:[#allocation2 + $0x109] sm:$0xff] %vm558_vm0, %v546_v42  ;;  %2267 = vmatpush3.xpose.msk.msra.mxu0 %vm558_vm0, %v918_v43 }
 0x1ee   : > { %v515_v45 = vpop.trf.xlu0  ;;  %v2617_v58 = vld [vmem:[#allocation2 + $0x3a] sm:$0xff]  ;;  %v2625_v61 = vld [vmem:[#allocation2 + $0x32] sm:$0xff] }
 0x1ef   : > { %1100 = vrot.lane.b32.xlu0 %v713_v44, %s2337_s10  ;;  %620 = vst.msk [vmem:[#allocation2 + $0x51] sm:$0xff] %vm558_vm0, %v515_v45  ;;  %v684_v0 = vld [vmem:[#allocation2 + $0x39] sm:$0xff] }
 0x1f0   : > { %1354 = vrot.lane.b32.xlu1 %v714_v39, %s2336_s28  ;;  %v547_v46 = vpop.trf.xlu1  ;;  %v841_v1 = vld [vmem:[#allocation2 + $0x38] sm:$0xff] }
 0x1f1   : > { %636 = vst.msk [vmem:[#allocation2 + $0x111] sm:$0xff] %vm558_vm0, %v547_v46 }
 0x1f2   : > { %v516_v48 = vpop.trf.xlu0  ;;  %v842_v6 = vld [vmem:[#allocation2 + $0x48] sm:$0xff] }
 0x1f3   : > { %1226 = vrot.lane.b32.xlu0 %v744_v47, %s2338_s11  ;;  %621 = vst.msk [vmem:[#allocation2 + $0x61] sm:$0xff] %vm558_vm0, %v516_v48  ;;  %v874_v9 = vld [vmem:[#allocation2 + $0x49] sm:$0xff] }
 0x1f4   : > { %1352 = vrot.lane.b32.xlu1 %v713_v44, %s2336_s28  ;;  %v548_v49 = vpop.trf.xlu1 }
 0x1f5   : > { %637 = vst.msk [vmem:[#allocation2 + $0x121] sm:$0xff] %vm558_vm0, %v548_v49 }
 0x1f6   : > { %v517_v52 = vpop.trf.xlu0  ;;  %v2649_v12 = vld [vmem:[#allocation2 + $0x52] sm:$0xff]  ;;  %v2657_v15 = vld [vmem:[#allocation2 + $0x4a] sm:$0xff] }
 0x1f7   : > { %976 = vrot.lane.b32.xlu0 %v683_v50, %s2336_s28  ;;  %622 = vst.msk [vmem:[#allocation2 + $0x69] sm:$0xff] %vm558_vm0, %v517_v52  ;;  %v686_v16 = vld [vmem:[#allocation2 + $0x51] sm:$0xff] }
 0x1f8   : > { %1510 = vrot.lane.b32.xlu1 %v855_v51, %s2337_s10  ;;  %v549_v53 = vpop.trf.xlu1  ;;  %v2662_v25 = vld [vmem:[#allocation2 + $0x50] sm:$0xff] }
 0x1f9   : > { %638 = vst.msk [vmem:[#allocation2 + $0x129] sm:$0xff] %vm558_vm0, %v549_v53  ;;  %3844 = vst [vmem:[#allocation11_spill] sm:$0xff] %v2662_v25  ;;  %v2784_v53 = vld [vmem:[#allocation2 + $0x112] sm:$0xff] }
 0x1fa   : > { %v518_v56 = vpop.trf.xlu0  ;;  %v2684_v30 = vld [vmem:[#allocation2 + $0x60] sm:$0xff] }
 0x1fb   : > { %1228 = vrot.lane.b32.xlu0 %v745_v54, %s2338_s11  ;;  %623 = vst.msk [vmem:[#allocation2 + $0x79] sm:$0xff] %vm558_vm0, %v518_v56  ;;  %3845 = vst [vmem:[#allocation12_spill] sm:$0xff] %v2684_v30  ;;  %v2702_v34 = vld [vmem:[#allocation2 + $0x61] sm:$0xff] }
 0x1fc   : > { %1638 = vrot.lane.b32.xlu1 %v887_v55, %s2338_s11  ;;  %v550_v57 = vpop.trf.xlu1  ;;  %3846 = vst [vmem:[#allocation13_spill] sm:$0xff] %v2702_v34  ;;  %v2796_v55 = vld [vmem:[#allocation2 + $0x10a] sm:$0xff] }
 0x1fd   : > { %639 = vst.msk [vmem:[#allocation2 + $0x139] sm:$0xff] %vm558_vm0, %v550_v57  ;;  %v2807_v57 = vld [vmem:[#allocation2 + $0xfa] sm:$0xff] }
 0x1fe   : > { %v519_v59 = vpop.trf.xlu0  ;;  %v814_v36 = vld [vmem:[#allocation2 + $0x6a] sm:$0xff]  ;;  %v813_v40 = vld [vmem:[#allocation2 + $0x62] sm:$0xff] }
 0x1ff   : > { %1480 = vrot.lane.b32.xlu0 %v745_v54, %s2337_s10  ;;  %624 = vst.msk [vmem:[#allocation2 + $0x81] sm:$0xff] %vm558_vm0, %v519_v59  ;;  %v2738_v43 = vld [vmem:[#allocation2 + $0x69] sm:$0xff]  ;;  %v2815_v59 = vld [vmem:[#allocation2 + $0xf2] sm:$0xff] }
 0x200   : > { %1358 = vrot.lane.b32.xlu1 %v2617_v58, %s2336_s28  ;;  %v551_v60 = vpop.trf.xlu1  ;;  %3847 = vst [vmem:[#allocation14_spill] sm:$0xff] %v2738_v43  ;;  %v2740_v44 = vld [vmem:[#allocation2 + $0x68] sm:$0xff] }
 0x201   : > { %640 = vst.msk [vmem:[#allocation2 + $0x141] sm:$0xff] %vm558_vm0, %v551_v60  ;;  %3848 = vst [vmem:[#allocation15_spill] sm:$0xff] %v2740_v44  ;;  %v2757_v48 = vld [vmem:[#allocation2 + $0x129] sm:$0xff] }
 0x202   : > { %v520_v62 = vpop.trf.xlu0  ;;  %v2762_v49 = vld [vmem:[#allocation2 + $0x12a] sm:$0xff]  ;;  %v2773_v51 = vld [vmem:[#allocation2 + $0x122] sm:$0xff]  ;;  %v2778_v52 = vld [vmem:[#allocation2 + $0x79] sm:$0xff] }
 0x203   : > { %1608 = vrot.lane.b32.xlu0 %v683_v50, %s2338_s11  ;;  %625 = vst.msk [vmem:[#allocation2 + $0x91] sm:$0xff] %vm558_vm0, %v520_v62  ;;  %v2766_v50 = vld [vmem:[#allocation2 + $0x78] sm:$0xff]  ;;  %3849 = vst [vmem:[#allocation16_spill] sm:$0xff] %v2778_v52 }
 0x204   : > { %1356 = vrot.lane.b32.xlu1 %v2625_v61, %s2336_s28  ;;  %v552_v63 = vpop.trf.xlu1  ;;  %v2790_v54 = vld [vmem:[#allocation2 + $0x139] sm:$0xff] }
 0x205   : > { %641 = vst.msk [vmem:[#allocation2 + $0x151] sm:$0xff] %vm558_vm0, %v552_v63 }
 0x206   : > { %v521_v2 = vpop.trf.xlu0  ;;  %v911_v45 = vld [vmem:[#allocation2 + $0x82] sm:$0xff]  ;;  %v910_v47 = vld [vmem:[#allocation2 + $0x7a] sm:$0xff] }
 0x207   : > { %978 = vrot.lane.b32.xlu0 %v684_v0, %s2336_s28  ;;  %626 = vst.msk [vmem:[#allocation2 + $0x99] sm:$0xff] %vm558_vm0, %v521_v2  ;;  %v2800_v56 = vld [vmem:[#allocation2 + $0x81] sm:$0xff] }
 0x208   : > { %1482 = vrot.lane.b32.xlu1 %v841_v1, %s2337_s10  ;;  %v553_v3 = vpop.trf.xlu1  ;;  %v2734_v42 = vld [vmem:[#allocation2 + $0x142] sm:$0xff]  ;;  %v2748_v46 = vld [vmem:[#allocation2 + $0x13a] sm:$0xff] }
 0x209   : > { %642 = vst.msk [vmem:[#allocation2 + $0x159] sm:$0xff] %vm558_vm0, %v553_v3  ;;  %v2825_v63 = vld [vmem:[#allocation2 + $0x80] sm:$0xff] }
 0x20a   : > { %v522_v4 = vpop.trf.xlu0  ;;  %v2842_v2 = vld [vmem:[#allocation2 + $0x141] sm:$0xff] }
 0x20b   : > { %1106 = vrot.lane.b32.xlu0 %v2617_v58, %s2337_s10  ;;  %627 = vst.msk [vmem:[#allocation2 + $0xa9] sm:$0xff] %vm558_vm0, %v522_v4 }
 0x20c   : > { %1610 = vrot.lane.b32.xlu1 %v684_v0, %s2338_s11  ;;  %v554_v5 = vpop.trf.xlu1 }
 0x20d   : > { %643 = vst.msk [vmem:[#allocation2 + $0x169] sm:$0xff] %vm558_vm0, %v554_v5  ;;  %v2852_v5 = vld [vmem:[#allocation2 + $0x91] sm:$0xff] }
 0x20e   : > { %v523_v7 = vpop.trf.xlu0  ;;  %v2719_v38 = vld [vmem:[#allocation2 + $0x9a] sm:$0xff]  ;;  %v2730_v41 = vld [vmem:[#allocation2 + $0x92] sm:$0xff] }
 0x20f   : > { %1104 = vrot.lane.b32.xlu0 %v2625_v61, %s2337_s10  ;;  %628 = vst.msk [vmem:[#allocation2 + $0xb1] sm:$0xff] %vm558_vm0, %v523_v7 }
 0x210   : > { %1484 = vrot.lane.b32.xlu1 %v842_v6, %s2337_s10  ;;  %v555_v8 = vpop.trf.xlu1  ;;  %v2712_v37 = vld [vmem:[#allocation2 + $0x15a] sm:$0xff]  ;;  %v2723_v39 = vld [vmem:[#allocation2 + $0x152] sm:$0xff] }
 0x211   : > { %644 = vst.msk [vmem:[#allocation2 + $0x171] sm:$0xff] %vm558_vm0, %v555_v8  ;;  %v2862_v8 = vld [vmem:[#allocation2 + $0x90] sm:$0xff]  ;;  %v2928_v20 = vld [vmem:[#allocation2 + $0x158] sm:$0xff] }
 0x212   : > { %v524_v10 = vpop.trf.xlu0  ;;  %3871 = vst [vmem:[#allocation38_spill] sm:$0xff] %v2928_v20  ;;  %v2948_v17 = vld [vmem:[#allocation2 + $0xa8] sm:$0xff] }
 0x213   : > { %1230 = vrot.lane.b32.xlu0 %v841_v1, %s2338_s11  ;;  %629 = vst.msk [vmem:[#allocation2 + $0xc1] sm:$0xff] %vm558_vm0, %v524_v10 }
 0x214   : > { %1612 = vrot.lane.b32.xlu1 %v874_v9, %s2338_s11  ;;  %v556_v11 = vpop.trf.xlu1 }
 0x215   : > { %645 = vst.msk [vmem:[#allocation2 + $0x181] sm:$0xff] %vm558_vm0, %v556_v11  ;;  %v2872_v11 = vld [vmem:[#allocation2 + $0x99] sm:$0xff] }
 0x216   : > { %v525_v13 = vpop.trf.xlu0  ;;  %v2694_v32 = vld [vmem:[#allocation2 + $0xb2] sm:$0xff]  ;;  %v2708_v35 = vld [vmem:[#allocation2 + $0xaa] sm:$0xff] }
 0x217   : > { %980 = vrot.lane.b32.xlu0 %v874_v9, %s2336_s28  ;;  %630 = vst.msk [vmem:[#allocation2 + $0xc9] sm:$0xff] %vm558_vm0, %v525_v13 }
 0x218   : > { %1362 = vrot.lane.b32.xlu1 %v2649_v12, %s2336_s28  ;;  %v557_v14 = vpop.trf.xlu1  ;;  %v2686_v31 = vld [vmem:[#allocation2 + $0x172] sm:$0xff]  ;;  %v2698_v33 = vld [vmem:[#allocation2 + $0x16a] sm:$0xff] }
 0x219   : > { %646 = vst.msk [vmem:[#allocation2 + $0x189] sm:$0xff] %vm558_vm0, %v557_v14 }
 0x21b   : > { %1232 = vrot.lane.b32.xlu0 %v842_v6, %s2338_s11 }
 0x21c   : > { %1360 = vrot.lane.b32.xlu1 %v2657_v15, %s2336_s28 }
 0x21e   : > { %v2667_v26 = vld [vmem:[#allocation2 + $0xca] sm:$0xff]  ;;  %v2680_v29 = vld [vmem:[#allocation2 + $0xc2] sm:$0xff] }
 0x21f   : > { %982 = vrot.lane.b32.xlu0 %v686_v16, %s2336_s28 }
 0x220   : > { %1486 = vrot.lane.b32.xlu1 %v2662_v25, %s2337_s10  ;;  %v2669_v27 = vld [vmem:[#allocation2 + $0x18a] sm:$0xff]  ;;  %v2673_v28 = vld [vmem:[#allocation2 + $0x182] sm:$0xff] }
 0x221   : > { %2268 = vmatprep.subr.msk.mxu0 %vm558_vm0, %v2669_v27 }
 0x222   : > { %2269 = vmatpush3.xpose.msk.msra.mxu0 %vm558_vm0, %v2667_v26 }
 0x223   : > { %1110 = vrot.lane.b32.xlu0 %v2649_v12, %s2337_s10  ;;  %2270 = vmatprep.subr.msk.mxu0 %vm558_vm0, %v2673_v28 }
 0x224   : > { %1614 = vrot.lane.b32.xlu1 %v686_v16, %s2338_s11  ;;  %v2890_v16 = vld [vmem:[#allocation2 + $0x151] sm:$0xff] }
 0x226   : > { %2271 = vmatpush3.xpose.msk.msra.mxu0 %vm558_vm0, %v2680_v29 }
 0x227   : > { %1108 = vrot.lane.b32.xlu0 %v2657_v15, %s2337_s10  ;;  %2272 = vmatprep.subr.msk.mxu0 %vm558_vm0, %v2686_v31 }
 0x228   : > { %1488 = vrot.lane.b32.xlu1 %v2684_v30, %s2337_s10 }
 0x22a   : > { %2273 = vmatpush3.xpose.msk.msra.mxu0 %vm558_vm0, %v2694_v32 }
 0x22b   : > { %1234 = vrot.lane.b32.xlu0 %v2662_v25, %s2338_s11  ;;  %2274 = vmatprep.subr.msk.mxu0 %vm558_vm0, %v2698_v33  ;;  %v3144_v25 = vld [vmem:[#allocation2 + $0xc9] sm:$0xff] }
 0x22c   : > { %1616 = vrot.lane.b32.xlu1 %v2702_v34, %s2338_s11 }
 0x22e   : > { %2275 = vmatpush3.xpose.msk.msra.mxu0 %vm558_vm0, %v2708_v35 }
 0x22f   : > { %984 = vrot.lane.b32.xlu0 %v2702_v34, %s2336_s28  ;;  %2276 = vmatprep.subr.msk.mxu0 %vm558_vm0, %v2712_v37 }
 0x230   : > { %1366 = vrot.lane.b32.xlu1 %v814_v36, %s2336_s28 }
 0x232   : > { %2277 = vmatpush3.xpose.msk.msra.mxu0 %vm558_vm0, %v2719_v38 }
 0x233   : > { %1236 = vrot.lane.b32.xlu0 %v2684_v30, %s2338_s11  ;;  %2278 = vmatprep.subr.msk.mxu0 %vm558_vm0, %v2723_v39 }
 0x234   : > { %1364 = vrot.lane.b32.xlu1 %v813_v40, %s2336_s28 }
 0x236   : > { %2279 = vmatpush3.xpose.msk.msra.mxu0 %vm558_vm0, %v2730_v41 }
 0x237   : > { %986 = vrot.lane.b32.xlu0 %v2738_v43, %s2336_s28  ;;  %2280 = vmatprep.subr.msk.mxu0 %vm558_vm0, %v2734_v42 }
 0x238   : > { %1490 = vrot.lane.b32.xlu1 %v2740_v44, %s2337_s10 }
 0x23a   : > { %2281 = vmatpush3.xpose.msk.msra.mxu0 %vm558_vm0, %v911_v45 }
 0x23b   : > { %1114 = vrot.lane.b32.xlu0 %v814_v36, %s2337_s10  ;;  %2282 = vmatprep.subr.msk.mxu0 %vm558_vm0, %v2748_v46 }
 0x23c   : > { %1618 = vrot.lane.b32.xlu1 %v2738_v43, %s2338_s11  ;;  %v3178_v43 = vld [vmem:[#allocation2 + $0x128] sm:$0xff] }
 0x23e   : > { %2283 = vmatpush3.xpose.msk.msra.mxu0 %vm558_vm0, %v910_v47 }
 0x23f   : > { %1112 = vrot.lane.b32.xlu0 %v813_v40, %s2337_s10  ;;  %2284 = vmatprep.subr.msk.mxu0 %vm558_vm0, %v2762_v49 }
 0x240   : > { %1018 = vrot.lane.b32.xlu1 %v2757_v48, %s2336_s28 }
 0x242   : > { %2285 = vmatpush3.xpose.msk.msra.mxu0 %vm558_vm0, %v814_v36 }
 0x243   : > { %1238 = vrot.lane.b32.xlu0 %v2740_v44, %s2338_s11  ;;  %2286 = vmatprep.subr.msk.mxu0 %vm558_vm0, %v2773_v51 }
 0x244   : > { %1492 = vrot.lane.b32.xlu1 %v2766_v50, %s2337_s10 }
 0x246   : > { %2287 = vmatpush3.xpose.msk.msra.mxu0 %vm558_vm0, %v813_v40 }
 0x247   : > { %988 = vrot.lane.b32.xlu0 %v2778_v52, %s2336_s28  ;;  %2288 = vmatprep.subr.msk.mxu0 %vm558_vm0, %v2784_v53 }
 0x248   : > { %1620 = vrot.lane.b32.xlu1 %v2778_v52, %s2338_s11 }
 0x24a   : > { %2289 = vmatpush3.xpose.msk.msra.mxu0 %vm558_vm0, %v2649_v12 }
 0x24b   : > { %1240 = vrot.lane.b32.xlu0 %v2766_v50, %s2338_s11  ;;  %2290 = vmatprep.subr.msk.mxu0 %vm558_vm0, %v2796_v55 }
 0x24c   : > { %1020 = vrot.lane.b32.xlu1 %v2790_v54, %s2336_s28 }
 0x24e   : > { %2291 = vmatpush3.xpose.msk.msra.mxu0 %vm558_vm0, %v2657_v15 }
 0x24f   : > { %990 = vrot.lane.b32.xlu0 %v2800_v56, %s2336_s28  ;;  %2292 = vmatprep.subr.msk.mxu0 %vm558_vm0, %v2807_v57 }
 0x250   : > { %1370 = vrot.lane.b32.xlu1 %v911_v45, %s2336_s28 }
 0x252   : > { %2293 = vmatpush3.xpose.msk.msra.mxu0 %vm558_vm0, %v2617_v58 }
 0x253   : > { %1118 = vrot.lane.b32.xlu0 %v911_v45, %s2337_s10  ;;  %2294 = vmatprep.subr.msk.mxu0 %vm558_vm0, %v2815_v59  ;;  %v2902_v45 = vld [vmem:[#allocation2 + $0x150] sm:$0xff] }
 0x254   : > { %1368 = vrot.lane.b32.xlu1 %v910_v47, %s2336_s28  ;;  %3864 = vst [vmem:[#allocation31_spill] sm:$0xff] %v2902_v45 }
 0x255   : > { %v2819_v60 = vpop.permute.xlu0 %972 }
 0x256   : > { %3850 = vst [vmem:[#allocation17_spill] sm:$0xff] %v2819_v60  ;;  %v2821_v62 = vpop.permute.xlu1 %1224  ;;  %2295 = vmatpush3.xpose.msk.msra.mxu0 %vm558_vm0, %v2625_v61 }
 0x257   : > { %3851 = vst [vmem:[#allocation18_spill] sm:$0xff] %v2821_v62  ;;  %1116 = vrot.lane.b32.xlu0 %v910_v47, %s2337_s10 }
 0x258   : > { %1494 = vrot.lane.b32.xlu1 %v2825_v63, %s2337_s10 }
 0x259   : > { %v2830_v58 = vpop.permute.xlu0 %974 }
 0x25a   : > { %3852 = vst [vmem:[#allocation19_spill] sm:$0xff] %v2830_v58  ;;  %v2832_v0 = vpop.permute.xlu1 %1508 }
 0x25b   : > { %1242 = vrot.lane.b32.xlu0 %v2825_v63, %s2338_s11 }
 0x25c   : > { %1622 = vrot.lane.b32.xlu1 %v2800_v56, %s2338_s11 }
 0x25d   : > { %v2838_v1 = vpop.permute.xlu0 %1102 }
 0x25e   : > { %3853 = vst [vmem:[#allocation20_spill] sm:$0xff] %v2838_v1  ;;  %v2840_v61 = vpop.permute.xlu1 %1636  ;;  %v3006_v1 = vld [vmem:[#allocation2 + $0xb0] sm:$0xff] }
 0x25f   : > { %1402 = vrot.lane.b32.xlu0 %v2734_v42, %s2336_s28 }
 0x260   : > { %1022 = vrot.lane.b32.xlu1 %v2842_v2, %s2336_s28 }
 0x261   : > { %v2848_v3 = vpop.permute.xlu0 %1100 }
 0x262   : > { %3854 = vst [vmem:[#allocation21_spill] sm:$0xff] %v2848_v3  ;;  %v2850_v4 = vpop.permute.xlu1 %1354 }
 0x263   : > { %3855 = vst [vmem:[#allocation22_spill] sm:$0xff] %v2850_v4  ;;  %992 = vrot.lane.b32.xlu0 %v2852_v5, %s2336_s28  ;;  %v2970_v4 = vld [vmem:[#allocation2 + $0x169] sm:$0xff] }
 0x264   : > { %1150 = vrot.lane.b32.xlu1 %v2734_v42, %s2337_s10  ;;  %v2900_v42 = vld [vmem:[#allocation2 + $0x98] sm:$0xff] }
 0x265   : > { %v2858_v6 = vpop.permute.xlu0 %1226 }
 0x266   : > { %3856 = vst [vmem:[#allocation23_spill] sm:$0xff] %v2858_v6  ;;  %v2860_v7 = vpop.permute.xlu1 %1352 }
 0x267   : > { %3857 = vst [vmem:[#allocation24_spill] sm:$0xff] %v2860_v7  ;;  %1244 = vrot.lane.b32.xlu0 %v2862_v8, %s2338_s11  ;;  %v2950_v7 = vld [vmem:[#allocation2 + $0x159] sm:$0xff] }
 0x268   : > { %1148 = vrot.lane.b32.xlu1 %v2748_v46, %s2337_s10 }
 0x269   : > { %v2868_v9 = vpop.permute.xlu0 %976 }
 0x26a   : > { %3858 = vst [vmem:[#allocation25_spill] sm:$0xff] %v2868_v9  ;;  %v2870_v10 = vpop.permute.xlu1 %1510  ;;  %v3032_v9 = vld [vmem:[#allocation2 + $0x170] sm:$0xff] }
 0x26b   : > { %994 = vrot.lane.b32.xlu0 %v2872_v11, %s2336_s28 }
 0x26c   : > { %1496 = vrot.lane.b32.xlu1 %v2862_v8, %s2337_s10 }
 0x26d   : > { %v2878_v12 = vpop.permute.xlu0 %1228 }
 0x26e   : > { %3859 = vst [vmem:[#allocation26_spill] sm:$0xff] %v2878_v12  ;;  %v2880_v13 = vpop.permute.xlu1 %1638  ;;  %v2960_v12 = vld [vmem:[#allocation2 + $0x168] sm:$0xff] }
 0x26f   : > { %1122 = vrot.lane.b32.xlu0 %v2719_v38, %s2337_s10 }
 0x270   : > { %1624 = vrot.lane.b32.xlu1 %v2852_v5, %s2338_s11 }
 0x271   : > { %v2886_v14 = vpop.permute.xlu0 %1480 }
 0x272   : > { %3860 = vst [vmem:[#allocation27_spill] sm:$0xff] %v2886_v14  ;;  %v2888_v15 = vpop.permute.xlu1 %1358 }
 0x273   : > { %3861 = vst [vmem:[#allocation28_spill] sm:$0xff] %v2888_v15  ;;  %1120 = vrot.lane.b32.xlu0 %v2730_v41, %s2337_s10 }
 0x274   : > { %1024 = vrot.lane.b32.xlu1 %v2890_v16, %s2336_s28 }
 0x275   : > { %v2896_v36 = vpop.permute.xlu0 %1608 }
 0x276   : > { %3862 = vst [vmem:[#allocation29_spill] sm:$0xff] %v2896_v36  ;;  %v2898_v40 = vpop.permute.xlu1 %1356 }
 0x277   : > { %3863 = vst [vmem:[#allocation30_spill] sm:$0xff] %v2898_v40  ;;  %1246 = vrot.lane.b32.xlu0 %v2900_v42, %s2338_s11 }
 0x278   : > { %1276 = vrot.lane.b32.xlu1 %v2902_v45, %s2338_s11 }
 0x279   : > { %v2908_v47 = vpop.permute.xlu0 %978 }
 0x27a   : > { %3865 = vst [vmem:[#allocation32_spill] sm:$0xff] %v2908_v47  ;;  %v2910_v23 = vpop.permute.xlu1 %1482 }
 0x27b   : > { %3866 = vst [vmem:[#allocation33_spill] sm:$0xff] %v2910_v23  ;;  %1406 = vrot.lane.b32.xlu0 %v2712_v37, %s2336_s28 }
 0x27c   : > { %1374 = vrot.lane.b32.xlu1 %v2719_v38, %s2336_s28 }
 0x27d   : > { %v2916_v22 = vpop.permute.xlu0 %1106 }
 0x27e   : > { %3867 = vst [vmem:[#allocation34_spill] sm:$0xff] %v2916_v22  ;;  %v2918_v21 = vpop.permute.xlu1 %1610  ;;  %v757_v22 = vld [vmem:[#allocation2 + $0xc0] sm:$0xff] }
 0x27f   : > { %3868 = vst [vmem:[#allocation35_spill] sm:$0xff] %v2918_v21  ;;  %1404 = vrot.lane.b32.xlu0 %v2723_v39, %s2336_s28 }
 0x280   : > { %1372 = vrot.lane.b32.xlu1 %v2730_v41, %s2336_s28  ;;  %v2938_v41 = vld [vmem:[#allocation2 + $0xa9] sm:$0xff] }
 0x281   : > { %v2924_v62 = vpop.permute.xlu0 %1104 }
 0x282   : > { %3869 = vst [vmem:[#allocation36_spill] sm:$0xff] %v2924_v62  ;;  %v2926_v24 = vpop.permute.xlu1 %1484 }
 0x283   : > { %3870 = vst [vmem:[#allocation37_spill] sm:$0xff] %v2926_v24  ;;  %1530 = vrot.lane.b32.xlu0 %v2928_v20, %s2337_s10 }
 0x284   : > { %1498 = vrot.lane.b32.xlu1 %v2900_v42, %s2337_s10 }
 0x285   : > { %v2934_v38 = vpop.permute.xlu0 %1230 }
 0x286   : > { %3872 = vst [vmem:[#allocation39_spill] sm:$0xff] %v2934_v38  ;;  %v2936_v36 = vpop.permute.xlu1 %1612 }
 0x287   : > { %3873 = vst [vmem:[#allocation40_spill] sm:$0xff] %v2936_v36  ;;  %996 = vrot.lane.b32.xlu0 %v2938_v41, %s2336_s28 }
 0x288   : > { %1626 = vrot.lane.b32.xlu1 %v2872_v11, %s2338_s11 }
 0x289   : > { %v2944_v6 = vpop.permute.xlu0 %980 }
 0x28a   : > { %3874 = vst [vmem:[#allocation41_spill] sm:$0xff] %v2944_v6  ;;  %v2946_v14 = vpop.permute.xlu1 %1362 }
 0x28b   : > { %3875 = vst [vmem:[#allocation42_spill] sm:$0xff] %v2946_v14  ;;  %1248 = vrot.lane.b32.xlu0 %v2948_v17, %s2338_s11 }
 0x28c   : > { %1026 = vrot.lane.b32.xlu1 %v2950_v7, %s2336_s28 }
 0x28d   : > { %v2956_v19 = vpop.permute.xlu0 %1232 }
 0x28e   : > { %3876 = vst [vmem:[#allocation43_spill] sm:$0xff] %v2956_v19  ;;  %v2958_v21 = vpop.permute.xlu1 %1360 }
 0x28f   : > { %3877 = vst [vmem:[#allocation44_spill] sm:$0xff] %v2958_v21  ;;  %1532 = vrot.lane.b32.xlu0 %v2960_v12, %s2337_s10 }
 0x290   : > { %1154 = vrot.lane.b32.xlu1 %v2712_v37, %s2337_s10  ;;  %v2980_v37 = vld [vmem:[#allocation2 + $0xb1] sm:$0xff] }
 0x291   : > { %v2966_v23 = vpop.permute.xlu0 %982 }
 0x292   : > { %3878 = vst [vmem:[#allocation45_spill] sm:$0xff] %v2966_v23  ;;  %v2968_v18 = vpop.permute.xlu1 %1486 }
 0x293   : > { %3879 = vst [vmem:[#allocation46_spill] sm:$0xff] %v2968_v18  ;;  %1660 = vrot.lane.b32.xlu0 %v2970_v4, %s2338_s11 }
 0x294   : > { %1152 = vrot.lane.b32.xlu1 %v2723_v39, %s2337_s10 }
 0x295   : > { %v2976_v3 = vpop.permute.xlu0 %1110 }
 0x296   : > { %3880 = vst [vmem:[#allocation47_spill] sm:$0xff] %v2976_v3  ;;  %v2978_v60 = vpop.permute.xlu1 %1614 }
 0x297   : > { %3881 = vst [vmem:[#allocation48_spill] sm:$0xff] %v2978_v60  ;;  %998 = vrot.lane.b32.xlu0 %v2980_v37, %s2336_s28 }
 0x298   : > { %1278 = vrot.lane.b32.xlu1 %v2928_v20, %s2338_s11 }
 0x299   : > { %v2986_v36 = vpop.permute.xlu0 %1108 }
 0x29a   : > { %3882 = vst [vmem:[#allocation49_spill] sm:$0xff] %v2986_v36  ;;  %v2988_v38 = vpop.permute.xlu1 %1488  ;;  %v3066_v36 = vld [vmem:[#allocation2 + $0x181] sm:$0xff] }
 0x29b   : > { %3883 = vst [vmem:[#allocation50_spill] sm:$0xff] %v2988_v38  ;;  %1126 = vrot.lane.b32.xlu0 %v2694_v32, %s2337_s10  ;;  %v3042_v38 = vld [vmem:[#allocation2 + $0x171] sm:$0xff]  ;;  %3901 = vst [vmem:[#allocation68_spill] sm:$0xff] %v3066_v36 }
 0x29c   : > { %1500 = vrot.lane.b32.xlu1 %v2948_v17, %s2337_s10  ;;  %3895 = vst [vmem:[#allocation62_spill] sm:$0xff] %v3042_v38 }
 0x29d   : > { %v2994_v39 = vpop.permute.xlu0 %1234 }
 0x29e   : > { %3884 = vst [vmem:[#allocation51_spill] sm:$0xff] %v2994_v39  ;;  %v2996_v24 = vpop.permute.xlu1 %1616 }
 0x29f   : > { %3885 = vst [vmem:[#allocation52_spill] sm:$0xff] %v2996_v24  ;;  %1124 = vrot.lane.b32.xlu0 %v2708_v35, %s2337_s10 }
 0x2a0   : > { %1628 = vrot.lane.b32.xlu1 %v2938_v41, %s2338_s11 }
 0x2a1   : > { %v3002_v20 = vpop.permute.xlu0 %984 }
 0x2a2   : > { %3886 = vst [vmem:[#allocation53_spill] sm:$0xff] %v3002_v20  ;;  %v3004_v40 = vpop.permute.xlu1 %1366 }
 0x2a3   : > { %3887 = vst [vmem:[#allocation54_spill] sm:$0xff] %v3004_v40  ;;  %1250 = vrot.lane.b32.xlu0 %v3006_v1, %s2338_s11 }
 0x2a4   : > { %1028 = vrot.lane.b32.xlu1 %v2970_v4, %s2336_s28 }
 0x2a5   : > { %v3012_v58 = vpop.permute.xlu0 %1236 }
 0x2a6   : > { %3888 = vst [vmem:[#allocation55_spill] sm:$0xff] %v3012_v58  ;;  %v3014_v60 = vpop.permute.xlu1 %1364 }
 0x2a7   : > { %3889 = vst [vmem:[#allocation56_spill] sm:$0xff] %v3014_v60  ;;  %1410 = vrot.lane.b32.xlu0 %v2686_v31, %s2336_s28 }
 0x2a8   : > { %1280 = vrot.lane.b32.xlu1 %v2960_v12, %s2338_s11 }
 0x2a9   : > { %v3020_v19 = vpop.permute.xlu0 %986 }
 0x2aa   : > { %3890 = vst [vmem:[#allocation57_spill] sm:$0xff] %v3020_v19  ;;  %v3022_v18 = vpop.permute.xlu1 %1490 }
 0x2ab   : > { %3891 = vst [vmem:[#allocation58_spill] sm:$0xff] %v3022_v18  ;;  %1408 = vrot.lane.b32.xlu0 %v2698_v33, %s2336_s28 }
 0x2ac   : > { %1378 = vrot.lane.b32.xlu1 %v2694_v32, %s2336_s28 }
 0x2ad   : > { %v3028_v62 = vpop.permute.xlu0 %1114 }
 0x2ae   : > { %3892 = vst [vmem:[#allocation59_spill] sm:$0xff] %v3028_v62  ;;  %v3030_v15 = vpop.permute.xlu1 %1618 }
 0x2af   : > { %3893 = vst [vmem:[#allocation60_spill] sm:$0xff] %v3030_v15  ;;  %1534 = vrot.lane.b32.xlu0 %v3032_v9, %s2337_s10  ;;  %v868_v15 = vld [vmem:[#allocation2 + $0x180] sm:$0xff] }
 0x2b0   : > { %1376 = vrot.lane.b32.xlu1 %v2708_v35, %s2336_s28 }
 0x2b1   : > { %v3038_v24 = vpop.permute.xlu0 %1112 }
 0x2b2   : > { %3894 = vst [vmem:[#allocation61_spill] sm:$0xff] %v3038_v24  ;;  %v3040_v39 = vpop.permute.xlu1 %1018  ;;  %v3172_v24 = vld [vmem:[#allocation2 + $0x121] sm:$0xff] }
 0x2b3   : > { %1662 = vrot.lane.b32.xlu0 %v3042_v38, %s2338_s11 }
 0x2b4   : > { %1502 = vrot.lane.b32.xlu1 %v3006_v1, %s2337_s10 }
 0x2b5   : > { %v3048_v32 = vpop.permute.xlu0 %1238 }
 0x2b6   : > { %3896 = vst [vmem:[#allocation63_spill] sm:$0xff] %v3048_v32  ;;  %v3050_v21 = vpop.permute.xlu1 %1492 }
 0x2b7   : > { %3897 = vst [vmem:[#allocation64_spill] sm:$0xff] %v3050_v21  ;;  %1252 = vrot.lane.b32.xlu0 %v757_v22, %s2338_s11  ;;  %v3101_v21 = vld [vmem:[#allocation2 + $0xc1] sm:$0xff] }
 0x2b8   : > { %1630 = vrot.lane.b32.xlu1 %v2980_v37, %s2338_s11 }
 0x2b9   : > { %v3055_v35 = vpop.permute.xlu0 %988 }
 0x2ba   : > { %v3057_v47 = vpop.permute.xlu1 %1620 }
 0x2bb   : > { %3898 = vst [vmem:[#allocation65_spill] sm:$0xff] %v3057_v47  ;;  %1536 = vrot.lane.b32.xlu0 %v868_v15, %s2337_s10  ;;  %v3076_v47 = vld [vmem:[#allocation2 + $0xc8] sm:$0xff] }
 0x2bc   : > { %1030 = vrot.lane.b32.xlu1 %v3042_v38, %s2336_s28  ;;  %3902 = vst [vmem:[#allocation69_spill] sm:$0xff] %v3076_v47 }
 0x2bd   : > { %v3062_v58 = vpop.permute.xlu0 %1240 }
 0x2be   : > { %3899 = vst [vmem:[#allocation66_spill] sm:$0xff] %v3062_v58  ;;  %v3064_v18 = vpop.permute.xlu1 %1020 }
 0x2bf   : > { %3900 = vst [vmem:[#allocation67_spill] sm:$0xff] %v3064_v18  ;;  %1664 = vrot.lane.b32.xlu0 %v3066_v36, %s2338_s11 }
 0x2c0   : > { %1158 = vrot.lane.b32.xlu1 %v2686_v31, %s2337_s10 }
 0x2c1   : > { %v3072_v14 = vpop.permute.xlu0 %990 }
 0x2c2   : > { %v3074_v6 = vpop.permute.xlu1 %1370 }
 0x2c3   : > { %1254 = vrot.lane.b32.xlu0 %v3076_v47, %s2338_s11 }
 0x2c4   : > { %1156 = vrot.lane.b32.xlu1 %v2698_v33, %s2337_s10 }
 0x2c5   : > { %v3082_v18 = vpop.permute.xlu0 %1118 }
 0x2c6   : > { %v3084_v38 = vpop.permute.xlu1 %1368 }
 0x2c7   : > { %3903 = vst [vmem:[#allocation70_spill] sm:$0xff] %v3084_v38  ;;  %1658 = vrot.lane.b32.xlu0 %v2950_v7, %s2338_s11 }
 0x2c8   : > { %1282 = vrot.lane.b32.xlu1 %v3032_v9, %s2338_s11 }
 0x2c9   : > { %v3090_v31 = vpop.permute.xlu0 %1116 }
 0x2ca   : > { %v3092_v36 = vpop.permute.xlu1 %1494 }
 0x2cb   : > { %3904 = vst [vmem:[#allocation71_spill] sm:$0xff] %v3092_v36  ;;  %1400 = vrot.lane.b32.xlu0 %v2748_v46, %s2336_s28 }
 0x2cc   : > { %1504 = vrot.lane.b32.xlu1 %v757_v22, %s2337_s10 }
 0x2cd   : > { %v3097_v33 = vpop.permute.xlu0 %1242 }
 0x2ce   : > { %3905 = vst [vmem:[#allocation72_spill] sm:$0xff] %v3097_v33  ;;  %v3099_v32 = vpop.permute.xlu1 %1622 }
 0x2cf   : > { %3906 = vst [vmem:[#allocation73_spill] sm:$0xff] %v3099_v32  ;;  %1528 = vrot.lane.b32.xlu0 %v2902_v45, %s2337_s10  ;;  %v3154_v32 = vld [vmem:[#allocation2 + $0x138] sm:$0xff] }
 0x2d0   : > { %1632 = vrot.lane.b32.xlu1 %v3101_v21, %s2338_s11  ;;  %3915 = vst [vmem:[#allocation82_spill] sm:$0xff] %v3154_v32 }
 0x2d1   : > { %v3107_v34 = vpop.permute.xlu0 %1402 }
 0x2d2   : > { %v3109_v60 = vpop.permute.xlu1 %1022 }
 0x2d3   : > { %3907 = vst [vmem:[#allocation74_spill] sm:$0xff] %v3109_v60  ;;  %1656 = vrot.lane.b32.xlu0 %v2890_v16, %s2338_s11  ;;  %v3126_v60 = vld [vmem:[#allocation2 + $0x140] sm:$0xff] }
 0x2d4   : > { %1284 = vrot.lane.b32.xlu1 %v868_v15, %s2338_s11  ;;  %3911 = vst [vmem:[#allocation78_spill] sm:$0xff] %v3126_v60 }
 0x2d5   : > { %v3114_v22 = vpop.permute.xlu0 %992 }
 0x2d6   : > { %v3116_v46 = vpop.permute.xlu1 %1150 }
 0x2d7   : > { %3908 = vst [vmem:[#allocation75_spill] sm:$0xff] %v3116_v46  ;;  %1398 = vrot.lane.b32.xlu0 %v2762_v49, %s2336_s28 }
 0x2d8   : > { %1382 = vrot.lane.b32.xlu1 %v2667_v26, %s2336_s28 }
 0x2d9   : > { %v3122_v45 = vpop.permute.xlu0 %1244 }
 0x2da   : > { %3909 = vst [vmem:[#allocation76_spill] sm:$0xff] %v3122_v45  ;;  %v3124_v3 = vpop.permute.xlu1 %1148 }
 0x2db   : > { %3910 = vst [vmem:[#allocation77_spill] sm:$0xff] %v3124_v3  ;;  %1526 = vrot.lane.b32.xlu0 %v3126_v60, %s2337_s10 }
 0x2dc   : > { %1380 = vrot.lane.b32.xlu1 %v2680_v29, %s2336_s28 }
 0x2dd   : > { %v3132_v15 = vpop.permute.xlu0 %994 }
 0x2de   : > { %v3134_v46 = vpop.permute.xlu1 %1496 }
 0x2df   : > { %3912 = vst [vmem:[#allocation79_spill] sm:$0xff] %v3134_v46  ;;  %1654 = vrot.lane.b32.xlu0 %v2842_v2, %s2338_s11  ;;  %v3212_v46 = vld [vmem:[#allocation2 + $0x120] sm:$0xff] }
 0x2e0   : > { %1506 = vrot.lane.b32.xlu1 %v3076_v47, %s2337_s10  ;;  %3921 = vst [vmem:[#allocation88_spill] sm:$0xff] %v3212_v46 }
 0x2e1   : > { %v3140_v26 = vpop.permute.xlu0 %1122 }
 0x2e2   : > { %v3142_v3 = vpop.permute.xlu1 %1624 }
 0x2e3   : > { %3913 = vst [vmem:[#allocation80_spill] sm:$0xff] %v3142_v3  ;;  %1396 = vrot.lane.b32.xlu0 %v2773_v51, %s2336_s28  ;;  %v3196_v3 = vld [vmem:[#allocation2 + $0x111] sm:$0xff] }
 0x2e4   : > { %1634 = vrot.lane.b32.xlu1 %v3144_v25, %s2338_s11  ;;  %3918 = vst [vmem:[#allocation85_spill] sm:$0xff] %v3196_v3 }
 0x2e5   : > { %v3150_v29 = vpop.permute.xlu0 %1120 }
 0x2e6   : > { %v3152_v23 = vpop.permute.xlu1 %1024 }
 0x2e7   : > { %3914 = vst [vmem:[#allocation81_spill] sm:$0xff] %v3152_v23  ;;  %1524 = vrot.lane.b32.xlu0 %v3154_v32, %s2337_s10 }
 0x2e8   : > { %1146 = vrot.lane.b32.xlu1 %v2762_v49, %s2337_s10 }
 0x2e9   : > { %v3160_v47 = vpop.permute.xlu0 %1246 }
 0x2ea   : > { %v3162_v58 = vpop.permute.xlu1 %1276 }
 0x2eb   : > { %3916 = vst [vmem:[#allocation83_spill] sm:$0xff] %v3162_v58  ;;  %1652 = vrot.lane.b32.xlu0 %v2790_v54, %s2338_s11 }
 0x2ec   : > { %1274 = vrot.lane.b32.xlu1 %v3126_v60, %s2338_s11 }
 0x2ed   : > { %v3168_v36 = vpop.permute.xlu0 %1406 }
 0x2ee   : > { %v3170_v23 = vpop.permute.xlu1 %1374 }
 0x2ef   : > { %1394 = vrot.lane.b32.xlu0 %v2784_v53, %s2336_s28 }
 0x2f0   : > { %1016 = vrot.lane.b32.xlu1 %v3172_v24, %s2336_s28 }
 0x2f1   : > { %v1405_v49 = vpop.permute.xlu0 %1404 }
 0x2f2   : > { %v1373_v58 = vpop.permute.xlu1 %1372 }
 0x2f3   : > { %1522 = vrot.lane.b32.xlu0 %v3178_v43, %s2337_s10 }
 0x2f4   : > { %1144 = vrot.lane.b32.xlu1 %v2773_v51, %s2337_s10 }
 0x2f5   : > { %v3184_v60 = vpop.permute.xlu0 %1530 }
 0x2f6   : > { %v3186_v40 = vpop.permute.xlu1 %1498 }
 0x2f7   : > { %1650 = vrot.lane.b32.xlu0 %v2757_v48, %s2338_s11 }
 0x2f8   : > { %1272 = vrot.lane.b32.xlu1 %v3154_v32, %s2338_s11 }
 0x2f9   : > { %v3192_v30 = vpop.permute.xlu0 %996 }
 0x2fa   : > { %v3194_v20 = vpop.permute.xlu1 %1626 }
 0x2fb   : > { %3917 = vst [vmem:[#allocation84_spill] sm:$0xff] %v3194_v20  ;;  %1392 = vrot.lane.b32.xlu0 %v2796_v55, %s2336_s28 }
 0x2fc   : > { %1014 = vrot.lane.b32.xlu1 %v3196_v3, %s2336_s28 }
 0x2fd   : > { %v3202_v51 = vpop.permute.xlu0 %1248 }
 0x2fe   : > { %v3204_v33 = vpop.permute.xlu1 %1026 }
 0x2ff   : > { %3919 = vst [vmem:[#allocation86_spill] sm:$0xff] %v3204_v33  ;;  %1414 = vrot.lane.b32.xlu0 %v2669_v27, %s2336_s28  ;;  %v1828_v33 = vsel %vm558_vm0, %v2890_v16, %v1405_v49 }
 0x300   : > { %1142 = vrot.lane.b32.xlu1 %v2784_v53, %s2337_s10  ;;  %v3223_v53 = vld [vmem:[#allocation2 + $0x109] sm:$0xff] }
 0x301   : > { %v1533_v48 = vpop.permute.xlu0 %1532  ;;  %3923 = vst [vmem:[#allocation90_spill] sm:$0xff] %v3223_v53 }
 0x302   : > { %v3210_v32 = vpop.permute.xlu1 %1154  ;;  %v1860_v27 = vsel %vm1736_vm4, %v1828_v33, %v1533_v48  ;;  %v869_v33 = vld [vmem:[#allocation2 + $0x188] sm:$0xff] }
 0x303   : > { %3920 = vst [vmem:[#allocation87_spill] sm:$0xff] %v3210_v32  ;;  %1520 = vrot.lane.b32.xlu0 %v3212_v46, %s2337_s10  ;;  %v3241_v48 = vld [vmem:[#allocation2 + $0x189] sm:$0xff] }
 0x304   : > { %1270 = vrot.lane.b32.xlu1 %v3178_v43, %s2338_s11  ;;  %3926 = vst [vmem:[#allocation93_spill] sm:$0xff] %v3241_v48 }
 0x305   : > { %v1661_v52 = vpop.permute.xlu0 %1660 }
 0x306   : > { %v3221_v38 = vpop.permute.xlu1 %1152  ;;  %v3226_v32 = vsel %vm1769_vm5, %v1860_v27, %v1661_v52 }
 0x307   : > { %3922 = vst [vmem:[#allocation89_spill] sm:$0xff] %v3221_v38  ;;  %3924 = vst [vmem:[#allocation91_spill] sm:$0xff] %v3226_v32  ;;  %1412 = vrot.lane.b32.xlu0 %v2673_v28, %s2336_s28  ;;  %v1812_v28 = vsel %vm558_vm0, %v2852_v5, %v1373_v58 }
 0x308   : > { %1012 = vrot.lane.b32.xlu1 %v3223_v53, %s2336_s28 }
 0x309   : > { %v3232_v62 = vpop.permute.xlu0 %998 }
 0x30a   : > { %v3234_v16 = vpop.permute.xlu1 %1278 }
 0x30b   : > { %3925 = vst [vmem:[#allocation92_spill] sm:$0xff] %v3234_v16  ;;  %1538 = vrot.lane.b32.xlu0 %v869_v33, %s2337_s10 }
 0x30c   : > { %1140 = vrot.lane.b32.xlu1 %v2796_v55, %s2337_s10  ;;  %v3252_v55 = vld [vmem:[#allocation2 + $0xf9] sm:$0xff] }
 0x30d   : > { %v3239_v49 = vpop.permute.xlu0 %1126  ;;  %3927 = vst [vmem:[#allocation94_spill] sm:$0xff] %v3252_v55 }
 0x30e   : > { %v1501_v52 = vpop.permute.xlu1 %1500 }
 0x30f   : > { %1666 = vrot.lane.b32.xlu0 %v3241_v48, %s2338_s11  ;;  %v1844_v27 = vsel %vm1736_vm4, %v1812_v28, %v1501_v52 }
 0x310   : > { %1268 = vrot.lane.b32.xlu1 %v3212_v46, %s2338_s11 }
 0x311   : > { %v3250_v32 = vpop.permute.xlu0 %1124 }
 0x312   : > { %v1629_v16 = vpop.permute.xlu1 %1628 }
 0x313   : > { %v3255_v38 = vsel %vm1769_vm5, %v1844_v27, %v1629_v16  ;;  %1648 = vrot.lane.b32.xlu0 %v3172_v24, %s2338_s11  ;;  %v3271_v16 = vld [vmem:[#allocation2 + $0x110] sm:$0xff] }
 0x314   : > { %1010 = vrot.lane.b32.xlu1 %v3252_v55, %s2336_s28  ;;  %3930 = vst [vmem:[#allocation97_spill] sm:$0xff] %v3271_v16 }
 0x315   : > { %v3261_v48 = vpop.permute.xlu0 %1250 }
 0x316   : > { %v1029_v46 = vpop.permute.xlu1 %1028 }
 0x317   : > { %1390 = vrot.lane.b32.xlu0 %v2807_v57, %s2336_s28 }
 0x318   : > { %1138 = vrot.lane.b32.xlu1 %v2807_v57, %s2337_s10 }
 0x319   : > { %v3267_v58 = vpop.permute.xlu0 %1410 }
 0x31a   : > { %3928 = vst [vmem:[#allocation95_spill] sm:$0xff] %v3267_v58  ;;  %v3269_v5 = vpop.permute.xlu1 %1280 }
 0x31b   : > { %3929 = vst [vmem:[#allocation96_spill] sm:$0xff] %v3269_v5  ;;  %1518 = vrot.lane.b32.xlu0 %v3271_v16, %s2337_s10  ;;  %v3284_v5 = vld [vmem:[#allocation2 + $0xf1] sm:$0xff] }
 0x31c   : > { %1266 = vrot.lane.b32.xlu1 %v3271_v16, %s2338_s11  ;;  %3931 = vst [vmem:[#allocation98_spill] sm:$0xff] %v3284_v5  ;;  %v1829_v16 = vsel %vm558_vm0, %v2950_v7, %v3168_v36 }
 0x31d   : > { %v1409_v52 = vpop.permute.xlu0 %1408 }
 0x31e   : > { %v3277_v28 = vpop.permute.xlu1 %1378 }
 0x31f   : > { %1646 = vrot.lane.b32.xlu0 %v3196_v3, %s2338_s11 }
 0x320   : > { %1286 = vrot.lane.b32.xlu1 %v869_v33, %s2338_s11  ;;  %v3296_v33 = vld [vmem:[#allocation2 + $0x108] sm:$0xff] }
 0x321   : > { %v1535_v57 = vpop.permute.xlu0 %1534  ;;  %3932 = vst [vmem:[#allocation99_spill] sm:$0xff] %v3296_v33 }
 0x322   : > { %v3282_v27 = vpop.permute.xlu1 %1376  ;;  %v1861_v58 = vsel %vm1736_vm4, %v1829_v16, %v1535_v57  ;;  %v824_v16 = vld [vmem:[#allocation2 + $0xe2] sm:$0xff] }
 0x323   : > { %1388 = vrot.lane.b32.xlu0 %v2815_v59, %s2336_s28  ;;  %v3316_v57 = vld [vmem:[#allocation2 + $0xe1] sm:$0xff] }
 0x324   : > { %1008 = vrot.lane.b32.xlu1 %v3284_v5, %s2336_s28  ;;  %3934 = vst [vmem:[#allocation101_spill] sm:$0xff] %v3316_v57 }
 0x325   : > { %v1663_v3 = vpop.permute.xlu0 %1662 }
 0x326   : > { %v3294_v44 = vpop.permute.xlu1 %1502  ;;  %v3299_v19 = vsel %vm1769_vm5, %v1861_v58, %v1663_v3  ;;  %v1830_v3 = vsel %vm558_vm0, %v2970_v4, %v1409_v52  ;;  %v3326_v4 = vld [vmem:[#allocation2 + $0xf8] sm:$0xff] }
 0x327   : > { %3933 = vst [vmem:[#allocation100_spill] sm:$0xff] %v3299_v19  ;;  %1516 = vrot.lane.b32.xlu0 %v3296_v33, %s2337_s10 }
 0x328   : > { %1136 = vrot.lane.b32.xlu1 %v2815_v59, %s2337_s10 }
 0x329   : > { %v3305_v20 = vpop.permute.xlu0 %1252 }
 0x32a   : > { %v3307_v45 = vpop.permute.xlu1 %1630 }
 0x32b   : > { %1644 = vrot.lane.b32.xlu0 %v3223_v53, %s2338_s11 }
 0x32c   : > { %1264 = vrot.lane.b32.xlu1 %v3296_v33, %s2338_s11 }
 0x32d   : > { %v1537_v7 = vpop.permute.xlu0 %1536 }
 0x32e   : > { %v1031_v36 = vpop.permute.xlu1 %1030  ;;  %v1862_v58 = vsel %vm1736_vm4, %v1830_v3, %v1537_v7  ;;  %v1734_v3 = vsel %vm558_vm0, %v2960_v12, %v1029_v46  ;;  %v823_v12 = vld [vmem:[#allocation2 + $0xda] sm:$0xff] }
 0x32f   : > { %1386 = vrot.lane.b32.xlu0 %v824_v16, %s2336_s28  ;;  %v1735_v59 = vsel %vm558_vm0, %v3032_v9, %v1031_v36  ;;  %v3348_v46 = vld [vmem:[#allocation2 + $0xd9] sm:$0xff] }
 0x330   : > { %1006 = vrot.lane.b32.xlu1 %v3316_v57, %s2336_s28  ;;  %3935 = vst [vmem:[#allocation102_spill] sm:$0xff] %v3348_v46 }
 0x331   : > { %v1665_v53 = vpop.permute.xlu0 %1664 }
 0x332   : > { %v1159_v33 = vpop.permute.xlu1 %1158  ;;  %v3329_v52 = vsel %vm1769_vm5, %v1862_v58, %v1665_v53  ;;  %v1827_v53 = vsel %vm558_vm0, %v2842_v2, %v3107_v34  ;;  %v3356_v34 = vld [vmem:[#allocation2 + $0xf0] sm:$0xff] }
 0x333   : > { %v3324_v19 = vsel %vm1736_vm4, %v1735_v59, %v1159_v33  ;;  %1514 = vrot.lane.b32.xlu0 %v3326_v4, %s2337_s10  ;;  %v1859_v33 = vsel %vm1736_vm4, %v1827_v53, %v3184_v60  ;;  %3936 = vst [vmem:[#allocation103_spill] sm:$0xff] %v3356_v34 }
 0x334   : > { %1134 = vrot.lane.b32.xlu1 %v824_v16, %s2337_s10 }
 0x335   : > { %v1255_v7 = vpop.permute.xlu0 %1254 }
 0x336   : > { %v1157_v9 = vpop.permute.xlu1 %1156 }
 0x337   : > { %v1767_v36 = vsel %vm1736_vm4, %v1734_v3, %v1157_v9  ;;  %1642 = vrot.lane.b32.xlu0 %v3252_v55, %s2338_s11 }
 0x338   : > { %1262 = vrot.lane.b32.xlu1 %v3326_v4, %s2338_s11 }
 0x339   : > { %v1659_v58 = vpop.permute.xlu0 %1658 }
 0x33a   : > { %v3346_v16 = vpop.permute.xlu1 %1282  ;;  %v3351_v59 = vsel %vm1769_vm5, %v1859_v33, %v1659_v58 }
 0x33b   : > { %1384 = vrot.lane.b32.xlu0 %v823_v12, %s2336_s28 }
 0x33c   : > { %1004 = vrot.lane.b32.xlu1 %v3348_v46, %s2336_s28 }
 0x33d   : > { %v1401_v3 = vpop.permute.xlu0 %1400 }
 0x33e   : > { %v1505_v9 = vpop.permute.xlu1 %1504  ;;  %v1826_v60 = vsel %vm558_vm0, %v2790_v54, %v1401_v3 }
 0x33f   : > { %1512 = vrot.lane.b32.xlu0 %v3356_v34, %s2337_s10 }
 0x340   : > { %1132 = vrot.lane.b32.xlu1 %v823_v12, %s2337_s10 }
 0x341   : > { %v1529_v2 = vpop.permute.xlu0 %1528 }
 0x342   : > { %v1633_v53 = vpop.permute.xlu1 %1632  ;;  %v1858_v33 = vsel %vm1736_vm4, %v1826_v60, %v1529_v2  ;;  %v728_v2 = vld [vmem:[#allocation2 + $0xca] sm:$0xff] }
 0x343   : > { %1640 = vrot.lane.b32.xlu0 %v3284_v5, %s2338_s11  ;;  %v1719_v5 = vsel %vm558_vm0, %v3006_v1, %v3232_v62 }
 0x344   : > { %1260 = vrot.lane.b32.xlu1 %v3356_v34, %s2338_s11 }
 0x345   : > { %v1657_v58 = vpop.permute.xlu0 %1656 }
 0x346   : > { %v1285_v46 = vpop.permute.xlu1 %1284  ;;  %v3372_v12 = vsel %vm1769_vm5, %v1858_v33, %v1657_v58  ;;  %v798_v33 = vld [vmem:[#allocation2 + $0x129] sm:$0xff] }
 0x347   : > { %v3369_v57 = vsel %vm1769_vm5, %v1767_v36, %v1285_v46  ;;  %v1752_v46 = vsel %vm1736_vm4, %v1719_v5, %v3239_v49  ;;  %v1718_v49 = vsel %vm558_vm0, %v2948_v17, %v3192_v30  ;;  %v1899_v5 = vld [vmem:[%s3810_s6 + $0x8] sm:$0xff] }
 0x348   : > { %1002 = vrot.lane.b32.xlu1 %v3144_v25, %s2336_s28  ;;  %v1785_v34 = vsel %vm1769_vm5, %v1752_v46, %v1255_v7  ;;  %v1751_v7 = vsel %vm1736_vm4, %v1718_v49, %v3250_v32  ;;  %2064 = vmatprep.mubr.f32.mxu1 %v1899_v5  ;;  %v1717_v32 = vsel %vm558_vm0, %v2900_v42, %v3132_v15  ;;  %v3941_v5 = vld [vmem:[#allocation88_spill] sm:$0xff] }
 0x349   : > { %v1399_v54 = vpop.permute.xlu0 %1398  ;;  %v1814_v46 = vsel %vm558_vm0, %v2938_v41, %v3282_v27 }
 0x34a   : > { %v1383_v3 = vpop.permute.xlu1 %1382  ;;  %v1825_v55 = vsel %vm558_vm0, %v798_v33, %v1399_v54 }
 0x34b   : > { %v1817_v60 = vsel %vm558_vm0, %v3144_v25, %v1383_v3 }
 0x34c   : > { %1130 = vrot.lane.b32.xlu1 %v728_v2, %s2337_s10  ;;  %v1849_v36 = vsel %vm1736_vm4, %v1817_v60, %v2870_v10  ;;  %v3393_v10 = vld [vmem:[#allocation2 + $0xe0] sm:$0xff] }
 0x34d   : > { %v1881_v58 = vsel %vm1769_vm5, %v1849_v36, %v2880_v13  ;;  %v1527_v25 = vpop.permute.xlu0 %1526  ;;  %v1750_v36 = vsel %vm1736_vm4, %v1717_v32, %v3140_v26  ;;  %v1716_v26 = vsel %vm558_vm0, %v2862_v8, %v3114_v22  ;;  %v1729_v22 = vsel %vm558_vm0, %v3178_v43, %v3040_v39 }
 0x34e   : > { %2000 = vmatprep.subr.mxu1 %v1881_v58  ;;  %v1381_v3 = vpop.permute.xlu1 %1380  ;;  %v1857_v62 = vsel %vm1736_vm4, %v1825_v55, %v1527_v25  ;;  %v1900_v55 = vld [vmem:[%s3810_s6 + $0x10] sm:$0xff]  ;;  %v1783_v42 = vsel %vm1769_vm5, %v1750_v36, %v3261_v48  ;;  %v1813_v48 = vsel %vm558_vm0, %v2872_v11, %v3170_v23  ;;  %v1715_v11 = vsel %vm558_vm0, %v2825_v63, %v3072_v14 }
 0x34f   : > { %v1816_v1 = vsel %vm558_vm0, %v3101_v21, %v1381_v3  ;;  %2001 = vmatpush1.xpose.msra.mxu1 %v1785_v34  ;;  %2296 = vmatprep.mubr.msk.f32.mxu0 %vm558_vm0, %v1900_v55  ;;  %v1784_v34 = vsel %vm1769_vm5, %v1751_v7, %v3305_v20  ;;  %v1845_v8 = vsel %vm1736_vm4, %v1813_v48, %v3294_v44  ;;  %v3942_v7 = vld [vmem:[#allocation59_spill] sm:$0xff] }
 0x350   : > { %1258 = vrot.lane.b32.xlu1 %v3393_v10, %s2338_s11  ;;  %v1848_v13 = vsel %vm1736_vm4, %v1816_v1, %v2832_v0  ;;  %2297 = vmatmul.mubr.msk.f32.vlgmr.msra.gmra.mxu0 %vm558_vm0, %v1900_v55  ;;  %v1877_v23 = vsel %vm1769_vm5, %v1845_v8, %v3307_v45  ;;  %v1714_v63 = vsel %vm558_vm0, %v2766_v50, %v3055_v35  ;;  %v3937_v1 = vld [vmem:[#allocation76_spill] sm:$0xff]  ;;  %v3953_v48 = vld [vmem:[#allocation71_spill] sm:$0xff]  ;;  %v3954_v8 = vld [vmem:[#allocation66_spill] sm:$0xff] }
 0x351   : > { %v1880_v17 = vsel %vm1769_vm5, %v1848_v13, %v2840_v61  ;;  %v1655_v30 = vpop.permute.xlu0 %1654  ;;  %v1815_v61 = vsel %vm558_vm0, %v2980_v37, %v3277_v28  ;;  %v1846_v37 = vsel %vm1736_vm4, %v1814_v46, %v1505_v9  ;;  %v1749_v9 = vsel %vm1736_vm4, %v1716_v26, %v3150_v29  ;;  %v3938_v50 = vld [vmem:[#allocation84_spill] sm:$0xff]  ;;  %v3939_v13 = vld [vmem:[#allocation57_spill] sm:$0xff]  ;;  %v3951_v26 = vld [vmem:[#allocation14_spill] sm:$0xff] }
 0x352   : > { %2002 = vmatprep.subr.mxu1 %v1880_v17  ;;  %v1507_v0 = vpop.permute.xlu1 %1506  ;;  %v3417_v54 = vsel %vm1769_vm5, %v1857_v62, %v1655_v30  ;;  %v1878_v15 = vsel %vm1769_vm5, %v1846_v37, %v1633_v53  ;;  %v3450_v53 = vld [vmem:[#allocation2 + $0xd8] sm:$0xff]  ;;  %v1747_v62 = vsel %vm1736_vm4, %v1714_v63, %v3090_v31  ;;  %v3943_v17 = vld [vmem:[#allocation70_spill] sm:$0xff]  ;;  %v3948_v46 = vld [vmem:[#allocation53_spill] sm:$0xff] }
 0x353   : > { %2003 = vmatpush1.xpose.msra.mxu1 %v1784_v34  ;;  %v1847_v60 = vsel %vm1736_vm4, %v1815_v61, %v1507_v0  ;;  %v1780_v49 = vsel %vm1769_vm5, %v1747_v62, %v3937_v1  ;;  %v3944_v30 = vld [vmem:[#allocation16_spill] sm:$0xff]  ;;  %v3945_v61 = vld [vmem:[#allocation79_spill] sm:$0xff] }
 0x354   : > { %1000 = vrot.lane.b32.xlu1 %v3101_v21, %s2336_s28  ;;  %v727_v21 = vld [vmem:[#allocation2 + $0xc2] sm:$0xff]  ;;  %v1810_v0 = vsel %vm558_vm0, %v3944_v30, %v3943_v17 }
 0x355   : > { %v1397_v20 = vpop.permute.xlu0 %1396  ;;  %v1842_v32 = vsel %vm1736_vm4, %v1810_v0, %v3945_v61  ;;  %v3966_v30 = vld [vmem:[#allocation49_spill] sm:$0xff] }
 0x356   : > { %v1635_v2 = vpop.permute.xlu1 %1634  ;;  %v1824_v41 = vsel %vm558_vm0, %v3172_v24, %v1397_v20  ;;  %v1782_v24 = vsel %vm1769_vm5, %v1749_v9, %v3202_v51  ;;  %v1748_v51 = vsel %vm1736_vm4, %v1715_v11, %v3082_v18  ;;  %v1811_v18 = vsel %vm558_vm0, %v2800_v56, %v3074_v6  ;;  %v3956_v11 = vld [vmem:[#allocation45_spill] sm:$0xff] }
 0x357   : > { %v1879_v33 = vsel %vm1769_vm5, %v1847_v60, %v1635_v2  ;;  %v1781_v45 = vsel %vm1769_vm5, %v1748_v51, %v3160_v47  ;;  %v1843_v47 = vsel %vm1736_vm4, %v1811_v18, %v3186_v40  ;;  %v3946_v60 = vld [vmem:[#allocation72_spill] sm:$0xff]  ;;  %v3960_v18 = vld [vmem:[#allocation13_spill] sm:$0xff] }
 0x358   : > { %1128 = vrot.lane.b32.xlu1 %v727_v21, %s2337_s10  ;;  %2004 = vmatprep.subr.mxu1 %v1879_v33  ;;  %v1875_v35 = vsel %vm1769_vm5, %v1843_v47, %v3938_v50  ;;  %v3947_v2 = vld [vmem:[#allocation80_spill] sm:$0xff] }
 0x359   : > { %2005 = vmatpush1.xpose.msra.mxu1 %v1783_v42  ;;  %v1525_v28 = vpop.permute.xlu0 %1524  ;;  %v1874_v36 = vsel %vm1769_vm5, %v1842_v32, %v3947_v2  ;;  %v3949_v21 = vld [vmem:[#allocation12_spill] sm:$0xff]  ;;  %v3968_v32 = vld [vmem:[#allocation55_spill] sm:$0xff] }
 0x35a   : > { %2006 = vmatprep.subr.mxu1 %v1878_v15  ;;  %v1147_v27 = vpop.permute.xlu1 %1146  ;;  %v1856_v58 = vsel %vm1736_vm4, %v1824_v41, %v1525_v28  ;;  %v1712_v33 = vsel %vm558_vm0, %v3949_v21, %v3948_v46  ;;  %v3950_v15 = vld [vmem:[#allocation54_spill] sm:$0xff]  ;;  %v3952_v28 = vld [vmem:[#allocation61_spill] sm:$0xff]  ;;  %v3961_v47 = vld [vmem:[#allocation64_spill] sm:$0xff] }
 0x35b   : > { %v1762_v44 = vsel %vm1736_vm4, %v1729_v22, %v1147_v27  ;;  %v1809_v41 = vsel %vm558_vm0, %v3951_v26, %v3950_v15  ;;  %v1745_v27 = vsel %vm1736_vm4, %v1712_v33, %v3952_v28  ;;  %v3955_v22 = vld [vmem:[#allocation73_spill] sm:$0xff]  ;;  %v3970_v46 = vld [vmem:[#allocation32_spill] sm:$0xff]  ;;  %v3971_v15 = vld [vmem:[#allocation34_spill] sm:$0xff] }
 0x35c   : > { %1256 = vrot.lane.b32.xlu1 %v3450_v53, %s2338_s11  ;;  %v3972_v28 = vld [vmem:[#allocation44_spill] sm:$0xff] }
 0x35d   : > { %2007 = vmatpush1.xpose.msra.mxu1 %v1782_v24  ;;  %v1653_v29 = vpop.permute.xlu0 %1652  ;;  %v1778_v24 = vsel %vm1769_vm5, %v1745_v27, %v3954_v8  ;;  %v3974_v8 = vld [vmem:[#allocation51_spill] sm:$0xff] }
 0x35e   : > { %2008 = vmatprep.subr.mxu1 %v1877_v23  ;;  %v1275_v25 = vpop.permute.xlu1 %1274  ;;  %v3473_v43 = vsel %vm1769_vm5, %v1856_v58, %v1653_v29  ;;  %v1841_v58 = vsel %vm1736_vm4, %v1809_v41, %v3953_v48  ;;  %v2318_v41 = vld [vmem:[#allocation2 + $0x49] sm:$0xff] }
 0x35f   : > { %v3470_v3 = vsel %vm1769_vm5, %v1762_v44, %v1275_v25  ;;  %v1873_v23 = vsel %vm1769_vm5, %v1841_v58, %v3955_v22  ;;  %v3957_v44 = vld [vmem:[#allocation11_spill] sm:$0xff]  ;;  %v1806_v27 = vsel %vm558_vm0, %v2318_v41, %v3972_v28  ;;  %v3973_v48 = vld [vmem:[#allocation50_spill] sm:$0xff]  ;;  %v3975_v22 = vld [vmem:[#allocation52_spill] sm:$0xff] }
 0x360   : > { %v1711_v29 = vsel %vm558_vm0, %v3957_v44, %v3956_v11  ;;  %v1838_v58 = vsel %vm1736_vm4, %v1806_v27, %v3973_v48  ;;  %v2319_v11 = vld [vmem:[#allocation2 + $0x30] sm:$0xff]  ;;  %v3976_v44 = vld [vmem:[#allocation25_spill] sm:$0xff]  ;;  %v2323_v41 = vld [vmem:[#allocation2 + $0x18] sm:$0xff] }
 0x361   : > { %2009 = vmatpush1.xpose.msra.mxu1 %v1781_v45  ;;  %v3480_v14 = vpop.permute.xlu0 %1394  ;;  %v3958_v45 = vld [vmem:[#allocation47_spill] sm:$0xff]  ;;  %v3988_v28 = vld [vmem:[#allocation17_spill] sm:$0xff] }
 0x362   : > { %2010 = vmatprep.subr.mxu1 %v3255_v38  ;;  %v1017_v39 = vpop.permute.xlu1 %1016  ;;  %v3940_v38 = vld [vmem:[#allocation15_spill] sm:$0xff]  ;;  %v1744_v63 = vsel %vm1736_vm4, %v1711_v29, %v3958_v45  ;;  %v1708_v29 = vsel %vm558_vm0, %v2319_v11, %v3976_v44  ;;  %v1706_v27 = vsel %vm558_vm0, %v2323_v41, %v3988_v28  ;;  %v3991_v44 = vld [vmem:[#allocation4_spill] sm:$0xff]  ;;  %v4002_v41 = vld [vmem:[#allocation6_spill] sm:$0xff] }
 0x363   : > { %v1713_v55 = vsel %vm558_vm0, %v3940_v38, %v3939_v13  ;;  %v1728_v56 = vsel %vm558_vm0, %v3941_v5, %v1017_v39  ;;  %v3959_v39 = vld [vmem:[#allocation56_spill] sm:$0xff]  ;;  %v2315_v38 = vld [vmem:[#allocation2 + $0x48] sm:$0xff] }
 0x364   : > { %v1746_v40 = vsel %vm1736_vm4, %v1713_v55, %v3942_v7  ;;  %v1808_v62 = vsel %vm558_vm0, %v3960_v18, %v3959_v39  ;;  %v3964_v55 = vld [vmem:[#allocation41_spill] sm:$0xff]  ;;  %v2316_v7 = vld [vmem:[#allocation2 + $0x51] sm:$0xff]  ;;  %v4003_v28 = vld [vmem:[#allocation10_spill] sm:$0xff] }
 0x365   : > { %2011 = vmatpush1.xpose.msra.mxu1 %v1780_v49  ;;  %v3499_v6 = vpop.permute.xlu0 %1522  ;;  %v1779_v20 = vsel %vm1769_vm5, %v1746_v40, %v3946_v60  ;;  %v1840_v1 = vsel %vm1736_vm4, %v1808_v62, %v3961_v47  ;;  %v3962_v49 = vld [vmem:[#allocation63_spill] sm:$0xff]  ;;  %v1710_v5 = vsel %vm558_vm0, %v2315_v38, %v3964_v55  ;;  %v3965_v40 = vld [vmem:[#allocation42_spill] sm:$0xff]  ;;  %v2320_v39 = vld [vmem:[#allocation2 + $0x39] sm:$0xff] }
 0x366   : > { %2012 = vmatprep.subr.mxu1 %v1875_v35  ;;  %v1145_v31 = vpop.permute.xlu1 %1144  ;;  %v1777_v50 = vsel %vm1769_vm5, %v1744_v63, %v3962_v49  ;;  %v3963_v35 = vld [vmem:[#allocation65_spill] sm:$0xff]  ;;  %v1807_v17 = vsel %vm558_vm0, %v2316_v7, %v3965_v40  ;;  %v1743_v0 = vsel %vm1736_vm4, %v1710_v5, %v3966_v30  ;;  %v3977_v18 = vld [vmem:[#allocation28_spill] sm:$0xff]  ;;  %v3979_v49 = vld [vmem:[#allocation46_spill] sm:$0xff] }
 0x367   : > { %v1761_v34 = vsel %vm1736_vm4, %v1728_v56, %v1145_v31  ;;  %v1872_v13 = vsel %vm1769_vm5, %v1840_v1, %v3963_v35  ;;  %v1776_v60 = vsel %vm1769_vm5, %v1743_v0, %v3968_v32  ;;  %v1805_v62 = vsel %vm558_vm0, %v2320_v39, %v3977_v18  ;;  %v3978_v47 = vld [vmem:[#allocation36_spill] sm:$0xff]  ;;  %v3980_v35 = vld [vmem:[#allocation43_spill] sm:$0xff]  ;;  %v2321_v5 = vld [vmem:[#allocation2 + $0x20] sm:$0xff] }
 0x368   : > { %v1741_v1 = vsel %vm1736_vm4, %v1708_v29, %v3978_v47  ;;  %v3981_v38 = vld [vmem:[#allocation48_spill] sm:$0xff]  ;;  %v3982_v7 = vld [vmem:[#allocation19_spill] sm:$0xff]  ;;  %v3984_v32 = vld [vmem:[#allocation30_spill] sm:$0xff] }
 0x369   : > { %2013 = vmatpush1.xpose.msra.mxu1 %v1779_v20  ;;  %v3516_v37 = vpop.permute.xlu0 %1650  ;;  %v3969_v20 = vld [vmem:[#allocation60_spill] sm:$0xff]  ;;  %v1707_v40 = vsel %vm558_vm0, %v2321_v5, %v3982_v7  ;;  %v3992_v39 = vld [vmem:[#allocation33_spill] sm:$0xff] }
 0x36a   : > { %2014 = vmatprep.subr.mxu1 %v1874_v36  ;;  %v1273_v42 = vpop.permute.xlu1 %1272  ;;  %v2317_v36 = vld [vmem:[#allocation2 + $0x38] sm:$0xff] }
 0x36b   : > { %v3524_v9 = vsel %vm1769_vm5, %v1761_v34, %v1273_v42  ;;  %v3967_v34 = vld [vmem:[#allocation58_spill] sm:$0xff]  ;;  %v1709_v21 = vsel %vm558_vm0, %v2317_v36, %v3970_v46  ;;  %v3983_v0 = vld [vmem:[#allocation20_spill] sm:$0xff]  ;;  %v3986_v36 = vld [vmem:[#allocation39_spill] sm:$0xff] }
 0x36c   : > { %v1839_v61 = vsel %vm1736_vm4, %v1807_v17, %v3967_v34  ;;  %v1742_v26 = vsel %vm1736_vm4, %v1709_v21, %v3971_v15  ;;  %v1740_v34 = vsel %vm1736_vm4, %v1707_v40, %v3983_v0  ;;  %v648_v21 = vld [vmem:[#allocation2 + $0x8] sm:$0xff]  ;;  %v3987_v15 = vld [vmem:[#allocation40_spill] sm:$0xff]  ;;  %v3997_v0 = vld [vmem:[#allocation93_spill] sm:$0xff] }
 0x36d   : > { %2015 = vmatpush1.xpose.msra.mxu1 %v1778_v24  ;;  %v3535_v25 = vpop.permute.xlu0 %1392  ;;  %v1871_v2 = vsel %vm1769_vm5, %v1839_v61, %v3969_v20  ;;  %v1775_v24 = vsel %vm1769_vm5, %v1742_v26, %v3974_v8  ;;  %v2322_v61 = vld [vmem:[#allocation2 + $0x31] sm:$0xff]  ;;  %v3985_v20 = vld [vmem:[#allocation37_spill] sm:$0xff]  ;;  %v1773_v46 = vsel %vm1769_vm5, %v1740_v34, %v3986_v36  ;;  %v1705_v29 = vsel %vm558_vm0, %v648_v21, %v3991_v44 }
 0x36e   : > { %2016 = vmatprep.subr.mxu1 %v1873_v23  ;;  %v3537_v51 = vpop.permute.xlu1 %1014  ;;  %v1870_v23 = vsel %vm1769_vm5, %v1838_v58, %v3975_v22  ;;  %v3989_v8 = vld [vmem:[#allocation21_spill] sm:$0xff]  ;;  %v3996_v7 = vld [vmem:[#allocation24_spill] sm:$0xff] }
 0x36f   : > { %v2324_v22 = vld [vmem:[#allocation2 + $0x21] sm:$0xff]  ;;  %v2325_v5 = vld [vmem:[#allocation2 + $0x19] sm:$0xff] }
 0x370   : > { %v1802_v40 = vsel %vm558_vm0, %v2325_v5, %v3996_v7 }
 0x371   : > { %2017 = vmatpush1.xpose.msra.mxu1 %v1777_v50  ;;  %v3552_v56 = vpop.permute.xlu0 %1414  ;;  %v1837_v50 = vsel %vm1736_vm4, %v1805_v62, %v3979_v49  ;;  %v3993_v62 = vld [vmem:[#allocation26_spill] sm:$0xff]  ;;  %v3994_v49 = vld [vmem:[#allocation35_spill] sm:$0xff] }
 0x372   : > { %2018 = vmatprep.subr.mxu1 %v1872_v13  ;;  %v3554_v31 = vpop.permute.xlu1 %1142  ;;  %v1774_v13 = vsel %vm1769_vm5, %v1741_v1, %v3980_v35  ;;  %v1869_v55 = vsel %vm1769_vm5, %v1837_v50, %v3981_v38  ;;  %v647_v1 = vld [vmem:[#allocation2] sm:$0xff]  ;;  %v1833_v34 = vsel %vm558_vm0, %v3997_v0, %v3552_v56 }
 0x373   : > { %v3995_v38 = vld [vmem:[#allocation5_spill] sm:$0xff]  ;;  %v1865_v56 = vsel %vm1736_vm4, %v1833_v34, %v4002_v41  ;;  %v4011_v34 = vld [vmem:[#allocation86_spill] sm:$0xff] }
 0x375   : > { %2019 = vmatpush1.xpose.msra.mxu1 %v1776_v60  ;;  %v3568_v33 = vpop.permute.xlu0 %1520  ;;  %v1804_v60 = vsel %vm558_vm0, %v2322_v61, %v3984_v32  ;;  %v3998_v61 = vld [vmem:[#allocation3_spill] sm:$0xff] }
 0x376   : > { %2020 = vmatprep.subr.mxu1 %v1871_v2  ;;  %v3570_v42 = vpop.permute.xlu1 %1270  ;;  %v1836_v2 = vsel %vm1736_vm4, %v1804_v60, %v3985_v20  ;;  %v1704_v32 = vsel %vm558_vm0, %v647_v1, %v3998_v61  ;;  %v3999_v60 = vld [vmem:[#allocation27_spill] sm:$0xff]  ;;  %v4012_v61 = vld [vmem:[#allocation38_spill] sm:$0xff] }
 0x377   : > { %v1868_v26 = vsel %vm1769_vm5, %v1836_v2, %v3987_v15  ;;  %v1834_v20 = vsel %vm1736_vm4, %v1802_v40, %v3999_v60  ;;  %v4000_v2 = vld [vmem:[#allocation23_spill] sm:$0xff] }
 0x378   : > { %v4013_v60 = vld [vmem:[#allocation87_spill] sm:$0xff] }
 0x379   : > { %2021 = vmatpush1.xpose.msra.mxu1 %v1775_v24  ;;  %v1413_v45 = vpop.permute.xlu0 %1412  ;;  %v1739_v24 = vsel %vm1736_vm4, %v1706_v27, %v3989_v8  ;;  %v1737_v27 = vsel %vm1736_vm4, %v1704_v32, %v4003_v28  ;;  %v4004_v8 = vld [vmem:[#allocation18_spill] sm:$0xff]  ;;  %v4017_v28 = vld [vmem:[#allocation96_spill] sm:$0xff] }
 0x37a   : > { %2022 = vmatprep.subr.mxu1 %v1870_v23  ;;  %v3584_v63 = vpop.permute.xlu1 %1012  ;;  %v3990_v23 = vld [vmem:[#allocation22_spill] sm:$0xff]  ;;  %v1772_v47 = vsel %vm1769_vm5, %v1739_v24, %v3993_v62  ;;  %v1770_v24 = vsel %vm1769_vm5, %v1737_v27, %v4004_v8 }
 0x37b   : > { %v1803_v11 = vsel %vm558_vm0, %v2324_v22, %v3990_v23  ;;  %v4005_v22 = vld [vmem:[#allocation7_spill] sm:$0xff]  ;;  %v4018_v8 = vld [vmem:[#allocation74_spill] sm:$0xff] }
 0x37c   : > { %v1835_v18 = vsel %vm1736_vm4, %v1803_v11, %v3992_v39  ;;  %v1897_v23 = vsel %vm1769_vm5, %v1865_v56, %v4005_v22  ;;  %v4006_v11 = vld [vmem:[#allocation68_spill] sm:$0xff] }
 0x37d   : > { %2023 = vmatpush1.xpose.msra.mxu1 %v1774_v13  ;;  %v1539_v17 = vpop.permute.xlu0 %1538  ;;  %v1867_v50 = vsel %vm1769_vm5, %v1835_v18, %v3994_v49  ;;  %v1832_v44 = vsel %vm558_vm0, %v4006_v11, %v1413_v45  ;;  %v4007_v18 = vld [vmem:[#allocation8_spill] sm:$0xff]  ;;  %v4009_v45 = vld [vmem:[#allocation95_spill] sm:$0xff] }
 0x37e   : > { %2024 = vmatprep.subr.mxu1 %v1869_v55  ;;  %v3598_v30 = vpop.permute.xlu1 %1140  ;;  %v1738_v55 = vsel %vm1736_vm4, %v1705_v29, %v3995_v38  ;;  %v1864_v62 = vsel %vm1736_vm4, %v1832_v44, %v4007_v18  ;;  %v4020_v22 = vld [vmem:[#allocation100_spill] sm:$0xff] }
 0x37f   : > { %v1771_v36 = vsel %vm1769_vm5, %v1738_v55, %v4000_v2  ;;  %v4010_v55 = vld [vmem:[#allocation62_spill] sm:$0xff]  ;;  %v4022_v44 = vld [vmem:[#allocation92_spill] sm:$0xff] }
 0x380   : > { %v1831_v5 = vsel %vm558_vm0, %v4010_v55, %v4009_v45  ;;  %v4026_v45 = vld [vmem:[#allocation77_spill] sm:$0xff] }
 0x381   : > { %2025 = vmatpush1.xpose.msra.mxu1 %v1773_v46  ;;  %v1667_v48 = vpop.permute.xlu0 %1666  ;;  %v4001_v46 = vld [vmem:[#allocation29_spill] sm:$0xff]  ;;  %v1863_v40 = vsel %vm1736_vm4, %v1831_v5, %v1539_v17 }
 0x382   : > { %2026 = vmatprep.subr.mxu1 %v1868_v26  ;;  %v3612_v58 = vpop.permute.xlu1 %1268  ;;  %v1866_v21 = vsel %vm1769_vm5, %v1834_v20, %v4001_v46  ;;  %v1895_v0 = vsel %vm1769_vm5, %v1863_v40, %v1667_v48  ;;  %v4014_v17 = vld [vmem:[#allocation81_spill] sm:$0xff]  ;;  %v4015_v46 = vld [vmem:[#allocation31_spill] sm:$0xff] }
 0x383   : > { %v4016_v48 = vld [vmem:[#allocation89_spill] sm:$0xff]  ;;  %v4027_v40 = vld [vmem:[#allocation83_spill] sm:$0xff] }
 0x385   : > { %2027 = vmatpush1.xpose.msra.mxu1 %v1772_v47  ;;  %v3626_v35 = vpop.permute.xlu0 %1648 }
 0x386   : > { %2028 = vmatprep.subr.mxu1 %v1867_v50  ;;  %v3628_v13 = vpop.permute.xlu1 %1010  ;;  %v4008_v50 = vld [vmem:[#allocation9_spill] sm:$0xff] }
 0x387   : > { %v1896_v38 = vsel %vm1769_vm5, %v1864_v62, %v4008_v50  ;;  %v4023_v62 = vld [vmem:[#allocation67_spill] sm:$0xff] }
 0x389   : > { %2029 = vmatpush1.xpose.msra.mxu1 %v1771_v36  ;;  %v3645_v15 = vpop.permute.xlu0 %1390 }
 0x38a   : > { %2030 = vmatprep.subr.mxu1 %v1866_v21  ;;  %v3647_v26 = vpop.permute.xlu1 %1138 }
 0x38d   : > { %2031 = vmatpush1.xpose.msra.mxu1 %v1770_v24  ;;  %v3659_v29 = vpop.permute.xlu0 %1518  ;;  %v4019_v24 = vld [vmem:[#allocation78_spill] sm:$0xff] }
 0x38e   : > { %2032 = vmatprep.subr.mxu1 %v1897_v23  ;;  %v3661_v39 = vpop.permute.xlu1 %1266  ;;  %v4021_v23 = vld [vmem:[#allocation75_spill] sm:$0xff] }
 0x391   : > { %v3665_v1 = vpop.permute.xlu0 %1646 }
 0x392   : > { %v1287_v47 = vpop.permute.xlu1 %1286 }
 0x393   : > { %v1801_v49 = vsel %vm1769_vm5, %v3324_v19, %v1287_v47  ;;  %v1733_v19 = vsel %vm558_vm0, %v4012_v61, %v4011_v34  ;;  %v4024_v47 = vld [vmem:[#allocation82_spill] sm:$0xff] }
 0x394   : > { %2033 = vmatpush2.xpose.msra.mxu1 %v1801_v49  ;;  %v1766_v20 = vsel %vm1736_vm4, %v1733_v19, %v4013_v60  ;;  %v1730_v49 = vsel %vm558_vm0, %v4024_v47, %v4023_v62  ;;  %v4028_v60 = vld [vmem:[#allocation97_spill] sm:$0xff] }
 0x395   : > { %2034 = vmatprep.subr.mxu1 %v1896_v38  ;;  %v3682_v32 = vpop.permute.xlu0 %1388  ;;  %v1799_v36 = vsel %vm1769_vm5, %v1766_v20, %v3346_v16  ;;  %v1731_v16 = vsel %vm558_vm0, %v4019_v24, %v4018_v8  ;;  %v4025_v38 = vld [vmem:[#allocation91_spill] sm:$0xff]  ;;  %v1763_v55 = vsel %vm1736_vm4, %v1730_v49, %v4026_v45  ;;  %v1727_v20 = vsel %vm558_vm0, %v4028_v60, %v3537_v51  ;;  %v4036_v49 = vld [vmem:[#allocation69_spill] sm:$0xff] }
 0x396   : > { %v3674_v7 = vpop.permute.xlu1 %1008  ;;  %v1764_v11 = vsel %vm1736_vm4, %v1731_v16, %v4021_v23  ;;  %v4034_v16 = vld [vmem:[#allocation98_spill] sm:$0xff] }
 0x397   : > { %v1797_v18 = vsel %vm1769_vm5, %v1764_v11, %v4022_v44  ;;  %v4035_v11 = vld [vmem:[#allocation101_spill] sm:$0xff] }
 0x398   : > { %2035 = vmatpush2.xpose.msra.mxu1 %v3369_v57  ;;  %v1732_v57 = vsel %vm558_vm0, %v4015_v46, %v4014_v17  ;;  %v1760_v17 = vsel %vm1736_vm4, %v1727_v20, %v3554_v31 }
 0x399   : > { %2036 = vmatprep.subr.mxu1 %v1895_v0  ;;  %v1765_v21 = vsel %vm1736_vm4, %v1732_v57, %v4016_v48  ;;  %v3694_v56 = vpop.permute.xlu0 %1516  ;;  %v1796_v0 = vsel %vm1769_vm5, %v1763_v55, %v4027_v40  ;;  %v1793_v46 = vsel %vm1769_vm5, %v1760_v17, %v3570_v42 }
 0x39a   : > { %v1137_v2 = vpop.permute.xlu1 %1136  ;;  %v1798_v27 = vsel %vm1769_vm5, %v1765_v21, %v4017_v28 }
 0x39c   : > { %2037 = vmatpush2.xpose.msra.mxu1 %v1799_v36 }
 0x39d   : > { %2038 = vmatprep.subr.mxu1 %v3329_v52  ;;  %v1645_v50 = vpop.permute.xlu0 %1644 }
 0x39e   : > { %v1265_v41 = vpop.permute.xlu1 %1264 }
 0x3a0   : > { %2039 = vmatpush2.xpose.msra.mxu1 %v1798_v27 }
 0x3a1   : > { %2040 = vmatprep.subr.mxu1 %v4020_v22  ;;  %v1387_v61 = vpop.permute.xlu0 %1386 }
 0x3a2   : > { %v1007_v52 = vpop.permute.xlu1 %1006 }
 0x3a4   : > { %2041 = vmatpush2.xpose.msra.mxu1 %v1797_v18 }
 0x3a5   : > { %2042 = vmatprep.subr.mxu1 %v4025_v38  ;;  %v1515_v36 = vpop.permute.xlu0 %1514 }
 0x3a6   : > { %v1135_v5 = vpop.permute.xlu1 %1134 }
 0x3a8   : > { %2043 = vmatpush2.xpose.msra.mxu1 %v1796_v0  ;;  %v663_v0 = vld [vmem:[#allocation2 + $0xc0] sm:$0xff] }
 0x3a9   : > { %2044 = vmatprep.subr.mxu1 %v3351_v59  ;;  %v1643_v48 = vpop.permute.xlu0 %1642 }
 0x3aa   : > { %v1263_v34 = vpop.permute.xlu1 %1262 }
 0x3ac   : > { %2045 = vmatpush2.xpose.msra.mxu1 %v3470_v3 }
 0x3ad   : > { %2046 = vmatprep.subr.mxu1 %v3372_v12  ;;  %v4029_v12 = vld [vmem:[#allocation99_spill] sm:$0xff]  ;;  %v1385_v27 = vpop.permute.xlu0 %1384 }
 0x3ae   : > { %v1005_v19 = vpop.permute.xlu1 %1004  ;;  %v1726_v3 = vsel %vm558_vm0, %v4029_v12, %v3584_v63 }
 0x3b0   : > { %2047 = vmatpush2.xpose.msra.mxu1 %v3524_v9  ;;  %v4030_v9 = vld [vmem:[#allocation85_spill] sm:$0xff] }
 0x3b1   : > { %2048 = vmatprep.subr.mxu1 %v3417_v54  ;;  %v1823_v51 = vsel %vm558_vm0, %v4030_v9, %v3480_v14  ;;  %v1759_v54 = vsel %vm1736_vm4, %v1726_v3, %v3598_v30  ;;  %v4031_v14 = vld [vmem:[#allocation90_spill] sm:$0xff]  ;;  %v1513_v23 = vpop.permute.xlu0 %1512 }
 0x3b2   : > { %v1133_v59 = vpop.permute.xlu1 %1132  ;;  %v1855_v31 = vsel %vm1736_vm4, %v1823_v51, %v3499_v6  ;;  %v1792_v42 = vsel %vm1769_vm5, %v1759_v54, %v3612_v58  ;;  %v1822_v30 = vsel %vm558_vm0, %v4031_v14, %v3535_v25  ;;  %v4033_v25 = vld [vmem:[#allocation94_spill] sm:$0xff] }
 0x3b3   : > { %v1887_v63 = vsel %vm1769_vm5, %v1855_v31, %v3516_v37  ;;  %v1854_v58 = vsel %vm1736_vm4, %v1822_v30, %v3568_v33 }
 0x3b4   : > { %2049 = vmatpush2.xpose.msra.mxu1 %v1793_v46  ;;  %v1886_v37 = vsel %vm1769_vm5, %v1854_v58, %v3626_v35 }
 0x3b5   : > { %2050 = vmatprep.subr.mxu1 %v3473_v43  ;;  %v1725_v43 = vsel %vm558_vm0, %v3326_v4, %v3628_v13  ;;  %v4032_v4 = vld [vmem:[#allocation103_spill] sm:$0xff]  ;;  %v1641_v47 = vpop.permute.xlu0 %1640 }
 0x3b6   : > { %v1261_v57 = vpop.permute.xlu1 %1260  ;;  %v1758_v6 = vsel %vm1736_vm4, %v1725_v43, %v3647_v26  ;;  %v1724_v13 = vsel %vm558_vm0, %v4032_v4, %v3674_v7  ;;  %v1821_v26 = vsel %vm558_vm0, %v4033_v25, %v3645_v15  ;;  %v1723_v7 = vsel %vm558_vm0, %v3393_v10, %v1007_v52 }
 0x3b7   : > { %v1791_v28 = vsel %vm1769_vm5, %v1758_v6, %v3661_v39  ;;  %v1757_v8 = vsel %vm1736_vm4, %v1724_v13, %v1137_v2  ;;  %v1853_v39 = vsel %vm1736_vm4, %v1821_v26, %v3659_v29  ;;  %v1820_v15 = vsel %vm558_vm0, %v4034_v16, %v3682_v32 }
 0x3b8   : > { %2051 = vmatpush2.xpose.msra.mxu1 %v1792_v42  ;;  %v1790_v24 = vsel %vm1769_vm5, %v1757_v8, %v1265_v41  ;;  %v1885_v35 = vsel %vm1769_vm5, %v1853_v39, %v3665_v1  ;;  %v1756_v2 = vsel %vm1736_vm4, %v1723_v7, %v1135_v5  ;;  %v1852_v29 = vsel %vm1736_vm4, %v1820_v15, %v3694_v56 }
 0x3b9   : > { %2052 = vmatprep.subr.mxu1 %v1887_v63  ;;  %v1789_v41 = vsel %vm1769_vm5, %v1756_v2, %v1263_v34  ;;  %v1884_v1 = vsel %vm1769_vm5, %v1852_v29, %v1645_v50  ;;  %v1722_v10 = vsel %vm558_vm0, %v3450_v53, %v1005_v19  ;;  %v1819_v52 = vsel %vm558_vm0, %v4035_v11, %v1387_v61  ;;  %v4037_v53 = vld [vmem:[#allocation102_spill] sm:$0xff] }
 0x3ba   : > { %v1003_v21 = vpop.permute.xlu1 %1002  ;;  %v1755_v32 = vsel %vm1736_vm4, %v1722_v10, %v1133_v59  ;;  %v1851_v18 = vsel %vm1736_vm4, %v1819_v52, %v1515_v36  ;;  %v1818_v38 = vsel %vm558_vm0, %v4037_v53, %v1385_v27  ;;  %v1898_v36 = vld [vmem:[%s3810_s6] sm:$0xff] }
 0x3bb   : > { %v1788_v56 = vsel %vm1769_vm5, %v1755_v32, %v1261_v57  ;;  %v1883_v62 = vsel %vm1769_vm5, %v1851_v18, %v1643_v48  ;;  %v1721_v50 = vsel %vm558_vm0, %v4036_v49, %v1003_v21  ;;  %v1850_v5 = vsel %vm1736_vm4, %v1818_v38, %v1513_v23 }
 0x3bc   : > { %2053 = vmatpush2.xpose.msra.mxu1 %v1791_v28  ;;  %v1882_v34 = vsel %vm1769_vm5, %v1850_v5, %v1641_v47 }
 0x3bd   : > { %2054 = vmatprep.subr.mxu1 %v1886_v37 }
 0x3be   : > { %v1131_v33 = vpop.permute.xlu1 %1130 }
 0x3bf   : > { %v1754_v45 = vsel %vm1736_vm4, %v1721_v50, %v1131_v33 }
 0x3c0   : > { %2055 = vmatpush2.xpose.msra.mxu1 %v1790_v24 }
 0x3c1   : > { %2056 = vmatprep.subr.mxu1 %v1885_v35 }
 0x3c2   : > { %v1259_v22 = vpop.permute.xlu1 %1258 }
 0x3c3   : > { %v1787_v40 = vsel %vm1769_vm5, %v1754_v45, %v1259_v22 }
 0x3c4   : > { %2057 = vmatpush2.xpose.msra.mxu1 %v1789_v41 }
 0x3c5   : > { %2058 = vmatprep.subr.mxu1 %v1884_v1 }
 0x3c6   : > { %v1001_v44 = vpop.permute.xlu1 %1000 }
 0x3c7   : > { %v1720_v61 = vsel %vm558_vm0, %v663_v0, %v1001_v44 }
 0x3c8   : > { %2059 = vmatpush2.xpose.msra.mxu1 %v1788_v56 }
 0x3c9   : > { %2060 = vmatprep.subr.mxu1 %v1883_v62 }
 0x3ca   : > { %v1129_v55 = vpop.permute.xlu1 %1128 }
 0x3cb   : > { %v1753_v19 = vsel %vm1736_vm4, %v1720_v61, %v1129_v55 }
 0x3cc   : > { %2061 = vmatpush2.xpose.msra.mxu1 %v1787_v40 }
 0x3cd   : > { %2062 = vmatprep.subr.mxu1 %v1882_v34 }
 0x3ce   : > { %v1257_v60 = vpop.permute.xlu1 %1256 }
 0x3cf   : > { %v1786_v20 = vsel %vm1769_vm5, %v1753_v19, %v1257_v60 }
 0x3d0   : > { %2063 = vmatpush2.xpose.msra.mxu1 %v1786_v20 }
 0x3d3   : > { %2065 = vmatmul.mubr.f32.vlgmr.msra.gmra.mxu1 %v1898_v36 }
 0x410   : > { %v2137_v17 = vpop.f32.mrf.mxu0 }
 0x412   : > { %v2139_v12 = vpop.f32.mrf.mxu0 }
 0x493   : > { %v2066_v59 = vpop.f32.mrf.mxu1 }
 0x494   : > { %v2138_v46 = vadd.f32 %v2137_v17, %v2066_v59 }
 0x495   : > { %v2068_v3 = vpop.f32.mrf.mxu1 }
 0x496   : > { %v2149_v9 = vrot.slane %v2138_v46, 4  ;;  %v2140_v51 = vadd.f32 %v2139_v12, %v2068_v3 }
 0x498   : > { %2153 = vst [vmem:[%s2403_s16 + $0x10] ss:$-12 sps:$4 sm:$0xff] %v2149_v9   ;;  %v2150_v54 = vrot.slane %v2140_v51, 4 }
 0x49a   : > { %2154 = vst [vmem:[%s2403_s16 + $0x18] ss:$-12 sps:$4 sm:$0xff] %v2150_v54  }
 0x49b PF: > { %s17_s24 = sadd.s32 1, %s2332_s24  }
 0x49c   : > { %p14_p4 = scmp.ge.s32.totalorder %s17_s24, 4  }
 0x49e   :  { %16 = sbr.rel (!%p14_p4) target bundleno = 1 (0x1), region = 80 }

</bundles_post_ra>
